<compile_context>
chip_gen: v5e
topology: v5e:2x2
jax: 0.10.0
libtpu: 0.0.40
codegen_flags: <defaults>
</compile_context>

<pallas_src>
import functools

import jax
import jax.numpy as jnp
from jax.experimental import pallas as pl
from jax.experimental.pallas import tpu as pltpu

LN_EPS = 1e-5


def _round_up(a, b):
    return (a + b - 1) // b * b


def _pfn_kernel(*refs, n_points, last_pfn, has_mask):
    """One pillar-tile of the PFN layer.

    refs (in order):
      x_ref : (tp*N, Cin)          flattened pillar/point features
      w_ref : (Cin, H)             linear weight, pre-transposed (resident)
      g_ref : (1, H)               LayerNorm gamma
      b_ref : (1, H)               LayerNorm beta
      m_ref : (tp*N, 1) bf16       [only if has_mask] 1.0 == masked point
      o_ref : (tp*N, 2H)           if not last_pfn   ([y | ymax] per point)
              (tp, H)              if last_pfn
    """
    if has_mask:
        x_ref, w_ref, g_ref, b_ref, m_ref, o_ref = refs
    else:
        x_ref, w_ref, g_ref, b_ref, o_ref = refs
        m_ref = None

    pn, _ = x_ref.shape                      # pn = tp * n_points
    h = w_ref.shape[1]
    tp = pn // n_points

    # ---- Linear (bias=False): single MXU matmul on the flattened slab. ----
    x = x_ref[...].astype(jnp.float32)
    w = w_ref[...].astype(jnp.float32)
    y = jnp.dot(x, w, preferred_element_type=jnp.float32)      # (pn, H)

    # ---- LayerNorm over the feature (lane) dim, f32 stats. ----
    mean = jnp.mean(y, axis=-1, keepdims=True)
    yc = y - mean
    var = jnp.mean(yc * yc, axis=-1, keepdims=True)
    y = yc * jax.lax.rsqrt(var + LN_EPS) * g_ref[...] + b_ref[...]

    # ---- ReLU ----
    y = jnp.maximum(y, 0.0)

    # ---- masked_fill(mask.unsqueeze(-1), -inf) ----
    if has_mask:
        # mask arrives point-per-sublane with one lane: broadcasting it across
        # the H lanes below is the cheap, well-supported direction.
        y = jnp.where(m_ref[...].astype(jnp.float32) > 0.5, -jnp.inf, y)

    # ---- per-pillar max over points (sublane reduction). ----
    # NOTE: the leading-dim split below is layout-free when n_points % 8 == 0.
    y3 = y.reshape(tp, n_points, h)
    if last_pfn:
        o_ref[...] = jnp.max(y3, axis=1).astype(o_ref.dtype)            # (tp, H)
    else:
        ymax = jnp.max(y3, axis=1, keepdims=True)                       # (tp, 1, H)
        ymax_flat = jnp.broadcast_to(ymax, (tp, n_points, h)).reshape(pn, h)
        # Single contiguous full-block store of [y | ymax] per point.
        o_ref[...] = jnp.concatenate([y, ymax_flat], axis=-1).astype(o_ref.dtype)


def pfn_layer_forward(x, weight, gamma, beta, mask=None, *, last_pfn=False,
                      pillar_tile=256, out_dtype=None,
                      vmem_limit_bytes=32 * 1024 * 1024):
    """PFNLayer forward.

    x      : (P, N, Cin) float   (pillars, points-per-pillar, features)
    weight : (H, Cin)            torch nn.Linear weight layout
    gamma  : (H,)  beta : (H,)   LayerNorm affine params
    mask   : optional (P, N) bool/float, truthy == masked point
    Returns (P, H) if last_pfn else (P, N, 2H), matching the PyTorch module.
    """
    P, N, Cin = x.shape
    H = weight.shape[0]
    assert weight.shape == (H, Cin)
    if out_dtype is None:
        out_dtype = x.dtype

    # Pillar tile: large (the kernel is HBM-bound); pad P so the grid divides
    # evenly, padded pillars are sliced off at the end.
    tp = int(min(pillar_tile, _round_up(max(P, 1), 8)))
    Pp = _round_up(P, tp)
    grid = (Pp // tp,)

    xf = jnp.asarray(x)
    if Pp != P:
        xf = jnp.pad(xf, ((0, Pp - P), (0, 0), (0, 0)))
    xf = xf.reshape(Pp * N, Cin)                          # row-major flatten
    w_t = jnp.asarray(weight, jnp.float32).T              # (Cin, H)
    g2 = jnp.asarray(gamma, jnp.float32).reshape(1, H)
    b2 = jnp.asarray(beta, jnp.float32).reshape(1, H)

    has_mask = mask is not None
    args = [xf, w_t, g2, b2]
    in_specs = [
        pl.BlockSpec((tp * N, Cin), lambda i: (i, 0)),    # pillar tile of x
        pl.BlockSpec((Cin, H), lambda i: (0, 0)),         # weight (resident)
        pl.BlockSpec((1, H), lambda i: (0, 0)),           # gamma
        pl.BlockSpec((1, H), lambda i: (0, 0)),           # beta
    ]
    if has_mask:
        m = jnp.asarray(mask, jnp.bfloat16).reshape(P, N)
        if Pp != P:
            m = jnp.pad(m, ((0, Pp - P), (0, 0)))
        args.append(m.reshape(Pp * N, 1))                 # point-per-sublane column
        in_specs.append(pl.BlockSpec((tp * N, 1), lambda i: (i, 0)))

    if last_pfn:
        out_shape = jax.ShapeDtypeStruct((Pp, H), out_dtype)
        out_specs = pl.BlockSpec((tp, H), lambda i: (i, 0))
    else:
        # Flattened (pillar*point, 2H): each step writes one contiguous HBM
        # slab; reshaping back to (P, N, 2H) afterwards is free.
        out_shape = jax.ShapeDtypeStruct((Pp * N, 2 * H), out_dtype)
        out_specs = pl.BlockSpec((tp * N, 2 * H), lambda i: (i, 0))

    kernel = functools.partial(_pfn_kernel, n_points=N,
                               last_pfn=last_pfn, has_mask=has_mask)
    out = pl.pallas_call(
        kernel,
        grid=grid,
        in_specs=in_specs,
        out_specs=out_specs,
        out_shape=out_shape,
        compiler_params=pltpu.CompilerParams(
            dimension_semantics=("parallel",),
            vmem_limit_bytes=vmem_limit_bytes,
        ),
    )(*args)

    if last_pfn:
        return out[:P]                                    # squeeze(-2) + unpad
    return out.reshape(Pp, N, 2 * H)[:P]


def pfn_layer_reference(x, weight, gamma, beta, mask=None, *, last_pfn=False):
    """Pure-JAX reference mirroring the PyTorch forward."""
    y = jnp.einsum("pnc,hc->pnh", x, weight)
    mean = jnp.mean(y, axis=-1, keepdims=True)
    var = jnp.mean((y - mean) ** 2, axis=-1, keepdims=True)
    y = (y - mean) / jnp.sqrt(var + LN_EPS) * gamma + beta
    y = jnp.maximum(y, 0.0)
    if mask is not None:
        y = jnp.where(mask[..., None], -jnp.inf, y)
    ymax = jnp.max(y, axis=-2, keepdims=True)
    if last_pfn:
        return ymax.squeeze(-2)
    return jnp.concatenate([y, jnp.broadcast_to(ymax, y.shape)], axis=-1)


if __name__ == "__main__":
    key = jax.random.PRNGKey(0)
    P, N, C_IN, OUT = 8, 32, 16, 64          # non-last layer -> hidden = 32
    H = OUT // 2                             # hidden_channels (last_layer=False)

    kx, kw, km = jax.random.split(key, 3)
    x = jax.random.normal(kx, (P, N, C_IN), jnp.float32)
    # nn.Linear(in, hidden, bias=False) weight: (hidden, in).
    weight = jax.random.normal(kw, (H, C_IN), jnp.float32) * (1.0 / jnp.sqrt(C_IN))
    gamma = jnp.ones((H,), jnp.float32)      # nn.LayerNorm default affine init
    beta = jnp.zeros((H,), jnp.float32)
    mask = jax.random.bernoulli(km, 0.2, (P, N))
    mask = mask & (~jnp.all(mask, axis=-1, keepdims=True))  # keep >=1 valid point

    # 1) Non-last PFN layer (concat output), with mask.
    out = jax.block_until_ready(
        pfn_layer_forward(x, weight, gamma, beta, mask, last_pfn=False))
    ref = pfn_layer_reference(x, weight, gamma, beta, mask, last_pfn=False)
    assert out.shape == (P, N, 2 * H)
    assert jnp.allclose(out, ref, atol=1e-5, rtol=1e-5), "non-last(mask) mismatch"

    # 2) Last PFN layer (max-pooled output), no mask.
    out_last = jax.block_until_ready(
        pfn_layer_forward(x, weight, gamma, beta, None, last_pfn=True))
    ref_last = pfn_layer_reference(x, weight, gamma, beta, None, last_pfn=True)
    assert out_last.shape == (P, H)
    assert jnp.allclose(out_last, ref_last, atol=1e-5, rtol=1e-5), "last mismatch"

    # 3) Non-divisible pillar count exercises the padding path (P=6 -> pad to 8).
    x6, m6 = x[:6], mask[:6]
    out6 = jax.block_until_ready(
        pfn_layer_forward(x6, weight, gamma, beta, m6, last_pfn=False))
    ref6 = pfn_layer_reference(x6, weight, gamma, beta, m6, last_pfn=False)
    assert out6.shape == (6, N, 2 * H)
    assert jnp.allclose(out6, ref6, atol=1e-5, rtol=1e-5), "padded-P mismatch"

    print("KERNEL_OK")
</pallas_src>

<mosaic_0001>
module attributes {stable_mosaic.version = 11 : i64} {
  func.func @_pfn_kernel(%arg0: i32, %arg1: memref<256x16xf32, #tpu.memory_space<vmem>>, %arg2: memref<16x32xf32, #tpu.memory_space<vmem>>, %arg3: memref<1x32xf32, #tpu.memory_space<vmem>>, %arg4: memref<1x32xf32, #tpu.memory_space<vmem>>, %arg5: memref<256x1xbf16, #tpu.memory_space<vmem>>, %arg6: memref<256x64xf32, #tpu.memory_space<vmem>>) attributes {dimension_semantics = [#tpu.dimension_semantics<parallel>], iteration_bounds = array<i64: 1>, scalar_prefetch = 0 : i64, scratch_operands = 0 : i64, tpu.core_type = #tpu.core_type<tc>, window_params = [{transform_indices = @transform_0, window_bounds = array<i64: 256, 16>}, {pipeline_mode = #tpu.pipeline_mode<synchronous>, transform_indices = @transform_1, window_bounds = array<i64: 16, 32>}, {pipeline_mode = #tpu.pipeline_mode<synchronous>, transform_indices = @transform_2, window_bounds = array<i64: 1, 32>}, {pipeline_mode = #tpu.pipeline_mode<synchronous>, transform_indices = @transform_3, window_bounds = array<i64: 1, 32>}, {transform_indices = @transform_4, window_bounds = array<i64: 256, 1>}, {transform_indices = @transform_5, window_bounds = array<i64: 256, 64>}]} {
    %c0 = arith.constant 0 : index
    %c0_0 = arith.constant 0 : index
    %0 = vector.load %arg1[%c0, %c0_0] : memref<256x16xf32, #tpu.memory_space<vmem>>, vector<256x16xf32>
    %c0_1 = arith.constant 0 : index
    %c0_2 = arith.constant 0 : index
    %1 = vector.load %arg2[%c0_1, %c0_2] : memref<16x32xf32, #tpu.memory_space<vmem>>, vector<16x32xf32>
    %cst = arith.constant dense<0.000000e+00> : vector<256x32xf32>
    %2 = tpu.matmul %0, %1, %cst {dimension_numbers = #tpu.dot_dimension_numbers<[1], [0], [0], [1], [0, 0, 1, 1], [], []>} : vector<256x16xf32>, vector<16x32xf32>, vector<256x32xf32> -> vector<256x32xf32>
    %cst_3 = arith.constant dense<0.000000e+00> : vector<256xf32>
    %3 = vector.multi_reduction <add>, %2, %cst_3 [1] : vector<256x32xf32> to vector<256xf32>
    %4 = vector.shape_cast %3 : vector<256xf32> to vector<256x1xf32>
    %cst_4 = arith.constant 3.200000e+01 : f32
    %5 = vector.broadcast %cst_4 : f32 to vector<256x1xf32>
    %6 = arith.divf %4, %5 : vector<256x1xf32>
    %7 = vector.broadcast %6 : vector<256x1xf32> to vector<256x32xf32>
    %8 = arith.subf %2, %7 : vector<256x32xf32>
    %9 = arith.mulf %8, %8 : vector<256x32xf32>
    %cst_5 = arith.constant dense<0.000000e+00> : vector<256xf32>
    %10 = vector.multi_reduction <add>, %9, %cst_5 [1] : vector<256x32xf32> to vector<256xf32>
    %11 = vector.shape_cast %10 : vector<256xf32> to vector<256x1xf32>
    %cst_6 = arith.constant 3.200000e+01 : f32
    %12 = vector.broadcast %cst_6 : f32 to vector<256x1xf32>
    %13 = arith.divf %11, %12 : vector<256x1xf32>
    %cst_7 = arith.constant 9.99999974E-6 : f32
    %14 = vector.broadcast %cst_7 : f32 to vector<256x1xf32>
    %15 = arith.addf %13, %14 : vector<256x1xf32>
    %16 = math.rsqrt %15 : vector<256x1xf32>
    %17 = vector.broadcast %16 : vector<256x1xf32> to vector<256x32xf32>
    %18 = arith.mulf %8, %17 : vector<256x32xf32>
    %c0_8 = arith.constant 0 : index
    %c0_9 = arith.constant 0 : index
    %19 = vector.load %arg3[%c0_8, %c0_9] : memref<1x32xf32, #tpu.memory_space<vmem>>, vector<1x32xf32>
    %20 = vector.broadcast %19 : vector<1x32xf32> to vector<256x32xf32>
    %21 = arith.mulf %18, %20 : vector<256x32xf32>
    %c0_10 = arith.constant 0 : index
    %c0_11 = arith.constant 0 : index
    %22 = vector.load %arg4[%c0_10, %c0_11] : memref<1x32xf32, #tpu.memory_space<vmem>>, vector<1x32xf32>
    %23 = vector.broadcast %22 : vector<1x32xf32> to vector<256x32xf32>
    %24 = arith.addf %21, %23 : vector<256x32xf32>
    %cst_12 = arith.constant 0.000000e+00 : f32
    %25 = vector.broadcast %cst_12 : f32 to vector<256x32xf32>
    %26 = arith.maximumf %24, %25 : vector<256x32xf32>
    %c0_13 = arith.constant 0 : index
    %c0_14 = arith.constant 0 : index
    %27 = vector.load %arg5[%c0_13, %c0_14] : memref<256x1xbf16, #tpu.memory_space<vmem>>, vector<256x1xbf16>
    %28 = arith.extf %27 : vector<256x1xbf16> to vector<256x1xf32>
    %cst_15 = arith.constant 5.000000e-01 : f32
    %29 = vector.broadcast %cst_15 : f32 to vector<256x1xf32>
    %30 = arith.cmpf ogt, %28, %29 : vector<256x1xf32>
    %cst_16 = arith.constant 0xFF800000 : f32
    %31 = vector.shape_cast %30 : vector<256x1xi1> to vector<256x1xi1>
    %32 = vector.broadcast %31 : vector<256x1xi1> to vector<256x32xi1>
    %33 = vector.broadcast %cst_16 : f32 to vector<256x32xf32>
    %34 = arith.select %32, %33, %26 : vector<256x32xi1>, vector<256x32xf32>
    %35 = vector.shape_cast %34 : vector<256x32xf32> to vector<8x32x32xf32>
    %cst_17 = arith.constant dense<0xFF800000> : vector<8x32xf32>
    %36 = vector.multi_reduction <maximumf>, %35, %cst_17 [1] : vector<8x32x32xf32> to vector<8x32xf32>
    %37 = vector.shape_cast %36 : vector<8x32xf32> to vector<8x1x32xf32>
    %38 = vector.shape_cast %37 : vector<8x1x32xf32> to vector<8x1x32xf32>
    %39 = vector.broadcast %38 : vector<8x1x32xf32> to vector<8x32x32xf32>
    %40 = vector.shape_cast %39 : vector<8x32x32xf32> to vector<256x32xf32>
    %41 = tpu.concatenate %34, %40 in 1 : vector<256x32xf32>, vector<256x32xf32> -> vector<256x64xf32>
    %c0_18 = arith.constant 0 : index
    %c0_19 = arith.constant 0 : index
    %42 = vector.load %arg6[%c0_18, %c0_19] : memref<256x64xf32, #tpu.memory_space<vmem>>, vector<256x64xf32>
    tpu.vector_store %arg6[%c0_18, %c0_19], %41 {strides = array<i32>} : memref<256x64xf32, #tpu.memory_space<vmem>>, vector<256x64xf32>,
    return
  }
  func.func @transform_0(%arg0: i32) -> (i32, i32) {
    %c0_i32 = arith.constant 0 : i32
    %c0_i32_0 = arith.constant 0 : i32
    return %arg0, %c0_i32 : i32, i32
  }
  func.func @transform_1(%arg0: i32) -> (i32, i32) {
    %c0_i32 = arith.constant 0 : i32
    %c0_i32_0 = arith.constant 0 : i32
    %c0_i32_1 = arith.constant 0 : i32
    return %c0_i32, %c0_i32_0 : i32, i32
  }
  func.func @transform_2(%arg0: i32) -> (i32, i32) {
    %c0_i32 = arith.constant 0 : i32
    %c0_i32_0 = arith.constant 0 : i32
    %c0_i32_1 = arith.constant 0 : i32
    return %c0_i32, %c0_i32_0 : i32, i32
  }
  func.func @transform_3(%arg0: i32) -> (i32, i32) {
    %c0_i32 = arith.constant 0 : i32
    %c0_i32_0 = arith.constant 0 : i32
    %c0_i32_1 = arith.constant 0 : i32
    return %c0_i32, %c0_i32_0 : i32, i32
  }
  func.func @transform_4(%arg0: i32) -> (i32, i32) {
    %c0_i32 = arith.constant 0 : i32
    %c0_i32_0 = arith.constant 0 : i32
    return %arg0, %c0_i32 : i32, i32
  }
  func.func @transform_5(%arg0: i32) -> (i32, i32) {
    %c0_i32 = arith.constant 0 : i32
    %c0_i32_0 = arith.constant 0 : i32
    return %arg0, %c0_i32 : i32, i32
  }
}

</mosaic_0001>

<bundles_post_ra>
// kernel: tpu_custom_call.1
= control target key start
LH: loop header
LB: loop body
LE: loop exit
PB: predicated region body
PF: predicated region fallthrough
CT: control target
= control target key end

     0   :  { %v3682_v2 = vmov 0   ;;  %vm54_vm0 = vcmask 130048   ;;  %s1768_s16 = smov 32   ;;  %s3676_s1 = inlined_call_operand.vmem [shape: f32[16,32], index: 1, kind: input, shape index: {}]   ;;  %s3677_s0 = inlined_call_operand.vmem [shape: f32[256,16], index: 0, kind: input, shape index: {}]   ;;  %s3678_s4 = inlined_call_operand.vmem [shape: bf16[256,1], index: 4, kind: input, shape index: {}]   ;;  %s3679_s2 = inlined_call_operand.vmem [shape: f32[1,32], index: 2, kind: input, shape index: {}]   ;;  %s3680_s3 = inlined_call_operand.vmem [shape: f32[1,32], index: 3, kind: input, shape index: {}]   ;;  %s3681_s5 = inlined_call_operand.vmem [shape: f32[256,64], index: 5, kind: output, shape index: {}]  }
   0x1   :  { %v53_v0 = vld [vmem:[%s3676_s1 + $0x8] sm:$0xff]  ;;  %v52_v1 = vld [vmem:[%s3676_s1] sm:$0xff]  ;;  %1695 = vset.pattern.permute.xlu0 %v3682_v2  ;;  %1694 = vset.pattern.permute.xlu2 %v3682_v2  ;;  %v1670_v12 = vld [vmem:[%s3678_s4 + $0x10] sm:$0xff]  }
   0x2   :  { %165 = vmatpush.msra.mxu0 %v53_v0  ;;  %1684 = vmatpush.msra.mxu1 %v53_v0  ;;  %v20_v3 = vld [vmem:[%s3677_s0] sm:$0xff]  ;;  %v1669_v5 = vld [vmem:[%s3678_s4 + $0x8] sm:$0xff]   ;;  %v1615_v19 = vunpack.c.l.bf16 %v1670_v12  ;;  %v1848_v21 = vld [vmem:[%s3678_s4 + $0x30] sm:$0xff]   ;;  %v1616_v30 = vunpack.c.h.bf16 %v1670_v12 }
   0x3   :  { %1685 = vmatpush.msra.mxu2 %v53_v0  ;;  %1686 = vmatpush.msra.mxu3 %v53_v0  ;;  %v28_v4 = vld [vmem:[%s3677_s0 + $0x40] sm:$0xff]  ;;  %v1611_v8 = vunpack.c.l.bf16 %v1669_v5  ;;  %v1612_v14 = vunpack.c.h.bf16 %v1669_v5  ;;  %v21_v20 = vld [vmem:[%s3677_s0 + $0x8] sm:$0xff]  ;;  %v1671_v24 = vld [vmem:[%s3678_s4 + $0x18] sm:$0xff]   ;;  %v1631_v29 = vunpack.c.l.bf16 %v1848_v21  ;;  %v1632_v0 = vunpack.c.h.bf16 %v1848_v21 }
   0x4   :  { %v1606_v6 = vld [vmem:[%s3678_s4] sm:$0xff]   ;;  %166 = vmatpush.msra.mxu0 %v52_v1  ;;  %1687 = vmatpush.msra.mxu1 %v52_v1  ;;  %vm1148_vm6 = vcmp.gt.f32.partialorder %v1615_v19, 0.5  ;;  %v37_v22 = vld [vmem:[%s3677_s0 + $0x88] sm:$0xff]  ;;  %v1619_v31 = vunpack.c.l.bf16 %v1671_v24  ;;  %vm1149_vm8 = vcmp.gt.f32.partialorder %v1616_v30, 0.5  ;;  %v22_v32 = vld [vmem:[%s3677_s0 + $0x10] sm:$0xff]  ;;  %v1620_v41 = vunpack.c.h.bf16 %v1671_v24 }
   0x5   :  { %v36_v7 = vld [vmem:[%s3677_s0 + $0x80] sm:$0xff]  ;;  %v1608_v9 = vunpack.c.h.bf16 %v1606_v6  ;;  %v1607_v10 = vunpack.c.l.bf16 %v1606_v6  ;;  %1688 = vmatpush.msra.mxu2 %v52_v1  ;;  %1689 = vmatpush.msra.mxu3 %v52_v1  ;;  %vm1146_vm1 = vcmp.gt.f32.partialorder %v1611_v8, 0.5  ;;  %vm1147_vm5 = vcmp.gt.f32.partialorder %v1612_v14, 0.5  ;;  %v29_v23 = vld [vmem:[%s3677_s0 + $0x48] sm:$0xff]  ;;  %v1675_v33 = vld [vmem:[%s3678_s4 + $0x38] sm:$0xff]  }
   0x6   :  { %v1825_v11 = vld [vmem:[%s3678_s4 + $0x20] sm:$0xff]   ;;  %1693 = vset.pattern.permute.xlu1 %v3682_v2  ;;  %1573 = vmatmul.msk.f32.vlgmr.msra.gmra.mxu0 %vm54_vm0, %v20_v3  ;;  %v1178_v16 = vsel %vm1146_vm1, 1, %v3682_v2  ;;  %v45_v25 = vld [vmem:[%s3677_s0 + $0xc8] sm:$0xff]  ;;  %v1179_v27 = vsel %vm1147_vm5, 1, %v3682_v2  ;;  %v1180_v28 = vsel %vm1148_vm6, 1, %v3682_v2  ;;  %vm1156_vm7 = vcmp.gt.f32.partialorder %v1631_v29, 0.5 }
   0x7   :  { %v44_v13 = vld [vmem:[%s3677_s0 + $0xc0] sm:$0xff]  ;;  %vm1145_vm2 = vcmp.gt.f32.partialorder %v1608_v9, 0.5  ;;  %vm1144_vm3 = vcmp.gt.f32.partialorder %v1607_v10, 0.5  ;;  %v1624_v15 = vunpack.c.h.bf16 %v1825_v11  ;;  %1581 = vmatmul.msk.f32.vlgmr.msra.gmra.mxu1 %vm54_vm0, %v28_v4  ;;  %1589 = vmatmul.msk.f32.vlgmr.msra.gmra.mxu2 %vm54_vm0, %v36_v7  ;;  %vm1150_vm9 = vcmp.gt.f32.partialorder %v1619_v31, 0.5  ;;  %v30_v34 = vld [vmem:[%s3677_s0 + $0x50] sm:$0xff]  ;;  %v23_v43 = vld [vmem:[%s3677_s0 + $0x18] sm:$0xff] }
   0x8   :  { %v1177_v17 = vsel %vm1145_vm2, 1, %v3682_v2  ;;  %v1176_v18 = vsel %vm1144_vm3, 1, %v3682_v2  ;;  %1597 = vmatmul.msk.f32.vlgmr.msra.gmra.mxu3 %vm54_vm0, %v44_v13  ;;  %1215 = vperm.xlu0 %1695, %v1178_v16   ;;  %v38_v35 = vld [vmem:[%s3677_s0 + $0x90] sm:$0xff]  ;;  %v1188_v37 = vsel %vm1156_vm7, 1, %v3682_v2  ;;  %v1181_v38 = vsel %vm1149_vm8, 1, %v3682_v2  ;;  %v1899_v44 = vld [vmem:[%s3678_s4 + $0x48] sm:$0xff]  }
   0x9   :  { %1212 = vperm.xlu2 %1694, %v1177_v17   ;;  %1209 = vperm.xlu1 %1693, %v1176_v18   ;;  %vm1153_vm4 = vcmp.gt.f32.partialorder %v1624_v15, 0.5  ;;  %v46_v36 = vld [vmem:[%s3677_s0 + $0xd0] sm:$0xff]  ;;  %v1182_v39 = vsel %vm1150_vm9, 1, %v3682_v2  ;;  %v1636_v40 = vunpack.c.h.bf16 %v1675_v33  ;;  %v1623_v42 = vunpack.c.l.bf16 %v1825_v11  ;;  %v31_v45 = vld [vmem:[%s3677_s0 + $0x58] sm:$0xff]  ;;  %v1673_v47 = vld [vmem:[%s3678_s4 + $0x28] sm:$0xff]  }
   0xa   :  { %v1185_v26 = vsel %vm1153_vm4, 1, %v3682_v2  ;;  %vm1151_vm11 = vcmp.gt.f32.partialorder %v1620_v41, 0.5  ;;  %v39_v46 = vld [vmem:[%s3677_s0 + $0x98] sm:$0xff]  ;;  %v1643_v52 = vunpack.c.l.bf16 %v1899_v44  ;;  %v1627_v53 = vunpack.c.l.bf16 %v1673_v47  ;;  %v24_v55 = vld [vmem:[%s3677_s0 + $0x20] sm:$0xff]  ;;  %v1678_v56 = vld [vmem:[%s3678_s4 + $0x50] sm:$0xff]  }
   0xb   :  { %vm1159_vm10 = vcmp.gt.f32.partialorder %v1636_v40, 0.5  ;;  %vm1152_vm12 = vcmp.gt.f32.partialorder %v1623_v42, 0.5  ;;  %v47_v49 = vld [vmem:[%s3677_s0 + $0xd8] sm:$0xff]  ;;  %v1183_v50 = vsel %vm1151_vm11, 1, %v3682_v2  ;;  %v1628_v54 = vunpack.c.h.bf16 %v1673_v47  ;;  %v40_v57 = vld [vmem:[%s3677_s0 + $0xa0] sm:$0xff]  ;;  %v1947_v3 = vld [vmem:[%s3678_s4 + $0x70] sm:$0xff]  }
   0xc   :  { %v1191_v48 = vsel %vm1159_vm10, 1, %v3682_v2  ;;  %v1184_v51 = vsel %vm1152_vm12, 1, %v3682_v2  ;;  %vm1162_vm13 = vcmp.gt.f32.partialorder %v1643_v52, 0.5  ;;  %vm1154_vm14 = vcmp.gt.f32.partialorder %v1627_v53, 0.5  ;;  %v32_v58 = vld [vmem:[%s3677_s0 + $0x60] sm:$0xff]  ;;  %v25_v4 = vld [vmem:[%s3677_s0 + $0x28] sm:$0xff] }
   0xd   :  { %vm1155_vm15 = vcmp.gt.f32.partialorder %v1628_v54, 0.5  ;;  %v1194_v59 = vsel %vm1162_vm13, 1, %v3682_v2  ;;  %v48_v60 = vld [vmem:[%s3677_s0 + $0xe0] sm:$0xff]  ;;  %v1186_v61 = vsel %vm1154_vm14, 1, %v3682_v2  ;;  %v1648_v63 = vunpack.c.h.bf16 %v1678_v56  ;;  %v41_v6 = vld [vmem:[%s3677_s0 + $0xa8] sm:$0xff]  ;;  %v26_v16 = vld [vmem:[%s3677_s0 + $0x30] sm:$0xff] }
   0xe   :  { %1574 = vmatmul.msk.f32.gmra.mxu0 %vm54_vm0, %v21_v20  ;;  %v1187_v62 = vsel %vm1155_vm15, 1, %v3682_v2  ;;  %v1635_v1 = vunpack.c.l.bf16 %v1675_v33  ;;  %vm1157_vm2 = vcmp.gt.f32.partialorder %v1632_v0, 0.5  ;;  %v1676_v5 = vld [vmem:[%s3678_s4 + $0x40] sm:$0xff]   ;;  %v33_v7 = vld [vmem:[%s3677_s0 + $0x68] sm:$0xff]  ;;  %v1663_v12 = vunpack.c.l.bf16 %v1947_v3  ;;  %v42_v17 = vld [vmem:[%s3677_s0 + $0xb0] sm:$0xff] }
   0xf   :  { %1590 = vmatmul.msk.f32.gmra.mxu2 %vm54_vm0, %v37_v22  ;;  %1582 = vmatmul.msk.f32.gmra.mxu1 %vm54_vm0, %v29_v23  ;;  %vm1165_vm1 = vcmp.gt.f32.partialorder %v1648_v63, 0.5  ;;  %v49_v9 = vld [vmem:[%s3677_s0 + $0xe8] sm:$0xff]  ;;  %v1189_v10 = vsel %vm1157_vm2, 1, %v3682_v2  ;;  %v1639_v13 = vunpack.c.l.bf16 %v1676_v5  ;;  %v1640_v14 = vunpack.c.h.bf16 %v1676_v5  ;;  %v34_v18 = vld [vmem:[%s3677_s0 + $0x70] sm:$0xff]  ;;  %v35_v29 = vld [vmem:[%s3677_s0 + $0x78] sm:$0xff] }
  0x10   :  { %1598 = vmatmul.msk.f32.gmra.mxu3 %vm54_vm0, %v45_v25  ;;  %1236 = vperm.xlu0 %1695, %v1185_v26   ;;  %vm1158_vm3 = vcmp.gt.f32.partialorder %v1635_v1, 0.5  ;;  %v1197_v8 = vsel %vm1165_vm1, 1, %v3682_v2  ;;  %vm1172_vm4 = vcmp.gt.f32.partialorder %v1663_v12, 0.5  ;;  %v1975_v15 = vld [vmem:[%s3678_s4 + $0x68] sm:$0xff]   ;;  %v50_v20 = vld [vmem:[%s3677_s0 + $0xf0] sm:$0xff]  ;;  %v1644_v24 = vunpack.c.h.bf16 %v1899_v44  ;;  %v27_v26 = vld [vmem:[%s3677_s0 + $0x38] sm:$0xff] }
  0x11   :  { %1218 = vperm.xlu2 %1694, %v1179_v27   ;;  %1221 = vperm.xlu1 %1693, %v1180_v28   ;;  %v1190_v11 = vsel %vm1158_vm3, 1, %v3682_v2  ;;  %vm1160_vm5 = vcmp.gt.f32.partialorder %v1639_v13, 0.5  ;;  %vm1161_vm6 = vcmp.gt.f32.partialorder %v1640_v14, 0.5  ;;  %v1204_v19 = vsel %vm1172_vm4, 1, %v3682_v2  ;;  %v1680_v27 = vld [vmem:[%s3678_s4 + $0x60] sm:$0xff]   ;;  %v43_v28 = vld [vmem:[%s3677_s0 + $0xb8] sm:$0xff] }
  0x12   :  { %v1192_v21 = vsel %vm1160_vm5, 1, %v3682_v2  ;;  %v1193_v22 = vsel %vm1161_vm6, 1, %v3682_v2  ;;  %v1659_v23 = vunpack.c.l.bf16 %v1975_v15  ;;  %v1647_v25 = vunpack.c.l.bf16 %v1678_v56  ;;  %v51_v31 = vld [vmem:[%s3677_s0 + $0xf8] sm:$0xff] }
  0x13   :  { %vm1163_vm8 = vcmp.gt.f32.partialorder %v1644_v24, 0.5  ;;  %v2032_v41 = vld [vmem:[%s3678_s4 + $0x78] sm:$0xff]   ;;  %vm264_vm14 = vcmask 261120  }
  0x14   :  { %vm1170_vm7 = vcmp.gt.f32.partialorder %v1659_v23, 0.5  ;;  %vm1164_vm9 = vcmp.gt.f32.partialorder %v1647_v25, 0.5  ;;  %v1667_v44 = vunpack.c.l.bf16 %v2032_v41 }
  0x15   :  { %v1202_v30 = vsel %vm1170_vm7, 1, %v3682_v2  ;;  %v1196_v33 = vsel %vm1164_vm9, 1, %v3682_v2 }
  0x16   :  { %1575 = vmatmul.msk.f32.gmra.mxu0 %vm54_vm0, %v22_v32  ;;  %v1195_v32 = vsel %vm1163_vm8, 1, %v3682_v2  ;;  %vm1174_vm13 = vcmp.gt.f32.partialorder %v1667_v44, 0.5 }
  0x17   :  { %1583 = vmatmul.msk.f32.gmra.mxu1 %vm54_vm0, %v30_v34  ;;  %1591 = vmatmul.msk.f32.gmra.mxu2 %vm54_vm0, %v38_v35  ;;  %v1655_v34 = vunpack.c.l.bf16 %v1680_v27  ;;  %v1656_v35 = vunpack.c.h.bf16 %v1680_v27 }
  0x18   :  { %1599 = vmatmul.msk.f32.gmra.mxu3 %vm54_vm0, %v46_v36  ;;  %1245 = vperm.xlu0 %1695, %v1188_v37   ;;  %v2023_v36 = vld [vmem:[%s3678_s4 + $0x58] sm:$0xff]  }
  0x19   :  { %1224 = vperm.xlu2 %1694, %v1181_v38   ;;  %1227 = vperm.xlu1 %1693, %v1182_v39   ;;  %vm1168_vm10 = vcmp.gt.f32.partialorder %v1655_v34, 0.5  ;;  %vm1169_vm11 = vcmp.gt.f32.partialorder %v1656_v35, 0.5  ;;  %v1664_v39 = vunpack.c.h.bf16 %v1947_v3  ;;  %v1651_v40 = vunpack.c.l.bf16 %v2023_v36 }
  0x1a   :  { %v1200_v37 = vsel %vm1168_vm10, 1, %v3682_v2  ;;  %v1201_v38 = vsel %vm1169_vm11, 1, %v3682_v2 }
  0x1b   :  { %vm1166_vm12 = vcmp.gt.f32.partialorder %v1651_v40, 0.5 }
  0x1e   :  { %1576 = vmatmul.msk.f32.gmra.mxu0 %vm54_vm0, %v23_v43  ;;  %v1198_v43 = vsel %vm1166_vm12, 1, %v3682_v2 }
  0x1f   :  { %1584 = vmatmul.msk.f32.gmra.mxu1 %vm54_vm0, %v31_v45  ;;  %1592 = vmatmul.msk.f32.gmra.mxu2 %vm54_vm0, %v39_v46  ;;  %v1206_v45 = vsel %vm1174_vm13, 1, %v3682_v2 }
  0x20   :  { %1254 = vperm.xlu0 %1695, %v1191_v48   ;;  %1600 = vmatmul.msk.f32.gmra.mxu3 %vm54_vm0, %v47_v49 }
  0x21   :  { %1230 = vperm.xlu2 %1694, %v1183_v50   ;;  %1233 = vperm.xlu1 %1693, %v1184_v51  }
  0x26   :  { %1577 = vmatmul.msk.f32.gmra.mxu0 %vm54_vm0, %v24_v55 }
  0x27   :  { %1593 = vmatmul.msk.f32.gmra.mxu2 %vm54_vm0, %v40_v57  ;;  %1585 = vmatmul.msk.f32.gmra.mxu1 %vm54_vm0, %v32_v58 }
  0x28   :  { %1263 = vperm.xlu0 %1695, %v1194_v59   ;;  %1601 = vmatmul.msk.f32.gmra.mxu3 %vm54_vm0, %v48_v60 }
  0x29   :  { %1239 = vperm.xlu2 %1694, %v1186_v61   ;;  %1242 = vperm.xlu1 %1693, %v1187_v62  }
  0x2e   :  { %1578 = vmatmul.msk.f32.gmra.mxu0 %vm54_vm0, %v25_v4 }
  0x2f   :  { %1594 = vmatmul.msk.f32.gmra.mxu2 %vm54_vm0, %v41_v6  ;;  %1586 = vmatmul.msk.f32.gmra.mxu1 %vm54_vm0, %v33_v7 }
  0x30   :  { %1272 = vperm.xlu0 %1695, %v1197_v8   ;;  %1602 = vmatmul.msk.f32.gmra.mxu3 %vm54_vm0, %v49_v9 }
  0x31   :  { %1248 = vperm.xlu2 %1694, %v1189_v10   ;;  %1251 = vperm.xlu1 %1693, %v1190_v11  }
  0x36   :  { %1579 = vmatmul.msk.f32.gmra.mxu0 %vm54_vm0, %v26_v16 }
  0x37   :  { %1595 = vmatmul.msk.f32.gmra.mxu2 %vm54_vm0, %v42_v17  ;;  %1587 = vmatmul.msk.f32.gmra.mxu1 %vm54_vm0, %v34_v18 }
  0x38   :  { %1293 = vperm.xlu0 %1695, %v1204_v19   ;;  %1603 = vmatmul.msk.f32.gmra.mxu3 %vm54_vm0, %v50_v20 }
  0x39   :  { %1257 = vperm.xlu2 %1694, %v1192_v21   ;;  %1260 = vperm.xlu1 %1693, %v1193_v22  }
  0x3e   :  { %1580 = vmatmul.msk.f32.gmra.mxu0 %vm54_vm0, %v27_v26 }
  0x3f   :  { %1596 = vmatmul.msk.f32.gmra.mxu2 %vm54_vm0, %v43_v28  ;;  %1588 = vmatmul.msk.f32.gmra.mxu1 %vm54_vm0, %v35_v29 }
  0x40   :  { %1287 = vperm.xlu0 %1695, %v1202_v30   ;;  %1604 = vmatmul.msk.f32.gmra.mxu3 %vm54_vm0, %v51_v31  ;;  %vm1173_vm0 = vcmp.gt.f32.partialorder %v1664_v39, 0.5 }
  0x41   :  { %1266 = vperm.xlu2 %1694, %v1195_v32   ;;  %1269 = vperm.xlu1 %1693, %v1196_v33   ;;  %v1205_v42 = vsel %vm1173_vm0, 1, %v3682_v2 }
  0x49   :  { %1281 = vperm.xlu2 %1694, %v1200_v37   ;;  %1284 = vperm.xlu1 %1693, %v1201_v38  }
  0x51   :  { %1296 = vperm.xlu2 %1694, %v1205_v42   ;;  %1275 = vperm.xlu1 %1693, %v1198_v43  }
  0x59   :  { %1299 = vperm.xlu2 %1694, %v1206_v45  }
  0x63   :  { %v2054_v54 = vpop.permute.xlu2 %1212 }
  0x6b   :  { %v2074_v0 = vpop.permute.xlu2 %1218 }
  0x73   :  { %v2092_v10 = vpop.permute.xlu2 %1224 }
  0x74   :  { %3711 = vst [vmem:[#allocation2_spill] sm:$0xff] %v2092_v10 }
  0x7a   :  { %v2108_v19 = vpop.permute.xlu0 %1215 }
  0x7b   :  { %v2084_v6 = vpop.permute.xlu1 %1209  ;;  %v2110_v20 = vpop.permute.xlu2 %1230 }
  0x7c   :  { %3713 = vst [vmem:[#allocation4_spill] sm:$0xff] %v2110_v20 }
  0x82   :  { %v2128_v29 = vpop.permute.xlu0 %1236 }
  0x83   :  { %v2038_v46 = vpop.f32.mrf.mxu0  ;;  %v2102_v16 = vpop.permute.xlu1 %1221 }
  0x84   :  { %v2040_v47 = vpop.f32.mrf.mxu1  ;;  %v265_v49 = vsel %vm264_vm14, %v2038_v46, 0.0  ;;  %3712 = vst [vmem:[#allocation3_spill] sm:$0xff] %v2102_v16  ;;  %v2132_v31 = vpop.permute.xlu2 %1239 }
  0x85   :  { %v289_v48 = vsel %vm264_vm14, %v2040_v47, 0.0  ;;  %266 = vadd.xlane.f32.xlu0 %v265_v49 }
  0x86   :  { %290 = vadd.xlane.f32.xlu2 %v289_v48 }
  0x8a   :  { %v2046_v50 = vpop.f32.mrf.mxu2  ;;  %v2148_v40 = vpop.permute.xlu0 %1245 }
  0x8b   :  { %v313_v51 = vsel %vm264_vm14, %v2046_v50, 0.0  ;;  %v2050_v52 = vpop.f32.mrf.mxu3  ;;  %v2052_v53 = vpop.f32.mrf.mxu0  ;;  %3715 = vst [vmem:[#allocation6_spill] sm:$0xff] %v2148_v40 }
  0x8c   :  { %314 = vadd.xlane.f32.xlu1 %v313_v51  ;;  %v337_v55 = vsel %vm264_vm14, %v2050_v52, 0.0  ;;  %v2058_v56 = vpop.f32.mrf.mxu1  ;;  %v268_v59 = vsel %vm264_vm14, %v2052_v53, 0.0  ;;  %v2120_v25 = vpop.permute.xlu1 %1227 }
  0x8d   :  { %338 = vadd.xlane.f32.xlu0 %v337_v55  ;;  %v292_v4 = vsel %vm264_vm14, %v2058_v56, 0.0  ;;  %3714 = vst [vmem:[#allocation5_spill] sm:$0xff] %v2120_v25  ;;  %v2152_v43 = vpop.permute.xlu2 %1248 }
  0x8e   :  { %3716 = vst [vmem:[#allocation7_spill] sm:$0xff] %v2152_v43 }
  0x92   :  { %v2060_v57 = vpop.f32.mrf.mxu2 }
  0x93   :  { %v316_v58 = vsel %vm264_vm14, %v2060_v57, 0.0  ;;  %v2066_v60 = vpop.f32.mrf.mxu3  ;;  %v2068_v61 = vpop.f32.mrf.mxu0 }
  0x94   :  { %317 = vadd.xlane.f32.xlu2 %v316_v58  ;;  %v340_v62 = vsel %vm264_vm14, %v2066_v60, 0.0  ;;  %v2072_v63 = vpop.f32.mrf.mxu1  ;;  %v271_v1 = vsel %vm264_vm14, %v2068_v61, 0.0  ;;  %v2140_v35 = vpop.permute.xlu1 %1233 }
  0x95   :  { %341 = vadd.xlane.f32.xlu1 %v340_v62  ;;  %269 = vadd.xlane.f32.xlu0 %v268_v59  ;;  %v295_v12 = vsel %vm264_vm14, %v2072_v63, 0.0  ;;  %v2168_v59 = vpop.permute.xlu0 %1254 }
  0x96   :  { %3717 = vst [vmem:[#allocation8_spill] sm:$0xff] %v2168_v59 }
  0x9a   :  { %v2082_v5 = vpop.f32.mrf.mxu2 }
  0x9b   :  { %v2078_v3 = vpop.f32.mrf.mxu3  ;;  %v2088_v8 = vpop.f32.mrf.mxu0  ;;  %v319_v13 = vsel %vm264_vm14, %v2082_v5, 0.0 }
  0x9c   :  { %v343_v7 = vsel %vm264_vm14, %v2078_v3, 0.0  ;;  %v2090_v9 = vpop.f32.mrf.mxu1  ;;  %v274_v21 = vsel %vm264_vm14, %v2088_v8, 0.0  ;;  %v2164_v55 = vpop.permute.xlu1 %1242 }
  0x9d   :  { %344 = vadd.xlane.f32.xlu2 %v343_v7  ;;  %272 = vadd.xlane.f32.xlu1 %v271_v1  ;;  %v298_v11 = vsel %vm264_vm14, %v2090_v9, 0.0  ;;  %v2172_v1 = vpop.permute.xlu2 %1257 }
  0x9e   :  { %293 = vadd.xlane.f32.xlu0 %v292_v4 }
  0xa2   :  { %v2100_v14 = vpop.f32.mrf.mxu2 }
  0xa3   :  { %v2104_v17 = vpop.f32.mrf.mxu0  ;;  %v2106_v18 = vpop.f32.mrf.mxu3  ;;  %v322_v27 = vsel %vm264_vm14, %v2100_v14, 0.0 }
  0xa4   :  { %v277_v22 = vsel %vm264_vm14, %v2104_v17, 0.0  ;;  %v346_v23 = vsel %vm264_vm14, %v2106_v18, 0.0  ;;  %v2122_v26 = vpop.f32.mrf.mxu1 }
  0xa5   :  { %299 = vadd.xlane.f32.xlu2 %v298_v11  ;;  %296 = vadd.xlane.f32.xlu1 %v295_v12  ;;  %v301_v30 = vsel %vm264_vm14, %v2122_v26, 0.0 }
  0xa6   :  { %320 = vadd.xlane.f32.xlu0 %v319_v13  ;;  %v2182_v13 = vpop.permute.xlu1 %1251 }
  0xa7   :  { %3718 = vst [vmem:[#allocation9_spill] sm:$0xff] %v2182_v13 }
  0xaa   :  { %v2118_v24 = vpop.f32.mrf.mxu2 }
  0xab   :  { %v325_v28 = vsel %vm264_vm14, %v2118_v24, 0.0  ;;  %v2134_v32 = vpop.f32.mrf.mxu3  ;;  %v2136_v33 = vpop.f32.mrf.mxu0 }
  0xac   :  { %v349_v37 = vsel %vm264_vm14, %v2134_v32, 0.0  ;;  %v280_v38 = vsel %vm264_vm14, %v2136_v33, 0.0  ;;  %v2150_v42 = vpop.f32.mrf.mxu1 }
  0xad   :  { %275 = vadd.xlane.f32.xlu1 %v274_v21  ;;  %278 = vadd.xlane.f32.xlu2 %v277_v22  ;;  %v304_v48 = vsel %vm264_vm14, %v2150_v42, 0.0 }
  0xae   :  { %347 = vadd.xlane.f32.xlu0 %v346_v23 }
  0xb2   :  { %v2138_v34 = vpop.f32.mrf.mxu2 }
  0xb3   :  { %v328_v39 = vsel %vm264_vm14, %v2138_v34, 0.0  ;;  %v2154_v44 = vpop.f32.mrf.mxu3  ;;  %v2156_v45 = vpop.f32.mrf.mxu0 }
  0xb4   :  { %v352_v49 = vsel %vm264_vm14, %v2154_v44, 0.0  ;;  %v283_v51 = vsel %vm264_vm14, %v2156_v45, 0.0  ;;  %v2170_v62 = vpop.f32.mrf.mxu1 }
  0xb5   :  { %323 = vadd.xlane.f32.xlu1 %v322_v27  ;;  %326 = vadd.xlane.f32.xlu2 %v325_v28  ;;  %v307_v11 = vsel %vm264_vm14, %v2170_v62, 0.0  ;;  %v2190_v27 = vpop.permute.xlu0 %1263  ;;  %v2192_v28 = vpop.permute.xlu2 %1266 }
  0xb6   :  { %302 = vadd.xlane.f32.xlu0 %v301_v30  ;;  %3719 = vst [vmem:[#allocation10_spill] sm:$0xff] %v2190_v27 }
  0xb7   :  { %3720 = vst [vmem:[#allocation11_spill] sm:$0xff] %v2192_v28 }
  0xba   :  { %v2166_v58 = vpop.f32.mrf.mxu2 }
  0xbb   :  { %v2174_v4 = vpop.f32.mrf.mxu3  ;;  %v331_v7 = vsel %vm264_vm14, %v2166_v58, 0.0  ;;  %v2184_v21 = vpop.f32.mrf.mxu0 }
  0xbc   :  { %v355_v12 = vsel %vm264_vm14, %v2174_v4, 0.0  ;;  %v2188_v23 = vpop.f32.mrf.mxu1 }
  0xbd   :  { %350 = vadd.xlane.f32.xlu1 %v349_v37  ;;  %281 = vadd.xlane.f32.xlu2 %v280_v38  ;;  %v286_v37 = vsel %vm264_vm14, %v2184_v21, 0.0  ;;  %v310_v38 = vsel %vm264_vm14, %v2188_v23, 0.0 }
  0xbe   :  { %329 = vadd.xlane.f32.xlu0 %v328_v39 }
  0xc2   :  { %v2186_v22 = vpop.f32.mrf.mxu2 }
  0xc3   :  { %v334_v30 = vsel %vm264_vm14, %v2186_v22, 0.0  ;;  %v2200_v39 = vpop.f32.mrf.mxu3 }
  0xc5   :  { %305 = vadd.xlane.f32.xlu1 %v304_v48  ;;  %353 = vadd.xlane.f32.xlu2 %v352_v49  ;;  %v2202_v48 = vpop.permute.xlu1 %1260  ;;  %v358_v49 = vsel %vm264_vm14, %v2200_v39, 0.0 }
  0xc6   :  { %284 = vadd.xlane.f32.xlu0 %v283_v51  ;;  %v2206_v51 = vpop.permute.xlu0 %1272 }
  0xc7   :  { %3721 = vst [vmem:[#allocation12_spill] sm:$0xff] %v2206_v51 }
  0xcd   :  { %332 = vadd.xlane.f32.xlu1 %v331_v7  ;;  %308 = vadd.xlane.f32.xlu2 %v307_v11  ;;  %v2208_v7 = vpop.permute.xlu2 %1281  ;;  %v1767_v11 = vmov 32.0  }
  0xce   :  { %356 = vadd.xlane.f32.xlu0 %v355_v12  ;;  %3722 = vst [vmem:[#allocation13_spill] sm:$0xff] %v2208_v7  ;;  %1698 = vrcp.f32 %v1767_v11  ;;  %v2210_v12 = vpop.permute.xlu1 %1269 }
  0xcf   :  { %3723 = vst [vmem:[#allocation14_spill] sm:$0xff] %v2210_v12 }
  0xd4   :  { %v1699_v2 = vpop.eup %1698 }
  0xd5   :  { %335 = vadd.xlane.f32.xlu2 %v334_v30  ;;  %287 = vadd.xlane.f32.xlu1 %v286_v37  ;;  %v2212_v30 = vpop.permute.xlu0 %1293  ;;  %v2214_v37 = vpop.permute.xlu2 %1296  ;;  %vm366_vm15 = vweird.f32 %v1699_v2 }
  0xd6   :  { %311 = vadd.xlane.f32.xlu0 %v310_v38  ;;  %3724 = vst [vmem:[#allocation15_spill] sm:$0xff] %v2212_v30  ;;  %v362_v38 = vmul.f32 32.0, %v1699_v2  ;;  %v2216_v59 = vpop.permute.xlu1 %1284 }
  0xd7   :  { %3725 = vst [vmem:[#allocation16_spill] sm:$0xff] %v2214_v37 }
  0xd8   :  { %v363_v13 = vsub.f32 1.0, %v362_v38  ;;  %3726 = vst [vmem:[#allocation17_spill] sm:$0xff] %v2216_v59 }
  0xda   :  { %v364_v43 = vmul.f32 %v1699_v2, %v363_v13 }
  0xdc   :  { %v365_v25 = vadd.f32 %v1699_v2, %v364_v43 }
  0xdd   :  { %359 = vadd.xlane.f32.xlu1 %v358_v49  ;;  %v2218_v40 = vpop.permute.xlu0 %1287  ;;  %v2220_v20 = vpop.permute.xlu2 %1299 }
  0xde   :  { %3727 = vst [vmem:[#allocation18_spill] sm:$0xff] %v2218_v40  ;;  %v2222_v49 = vpop.permute.xlu1 %1275  ;;  %v2224_v11 = vsel %vm366_vm15, %v1699_v2, %v365_v25 }
  0xdf   :  { %3728 = vst [vmem:[#allocation19_spill] sm:$0xff] %v2220_v20 }
  0xe0   :  { %3729 = vst [vmem:[#allocation20_spill] sm:$0xff] %v2222_v49 }
  0xf8   :  { %v267_v10 = vpop.xlane.xlu0 %266 }
  0xf9   :  { %v291_v16 = vpop.xlane.xlu2 %290  ;;  %v368_v12 = vmul.f32 %v2224_v11, %v267_v10 }
  0xfa   :  { %v376_v7 = vmul.f32 %v2224_v11, %v291_v16 }
  0xfb   :  { %v2232_v13 = vsub.f32 %v2038_v46, %v368_v12 }
  0xfc   :  { %v2229_v38 = vsub.f32 %v2040_v47, %v376_v7 }
  0xfd   :  { %v432_v43 = vmul.f32 %v2232_v13, %v2232_v13 }
  0xfe   :  { %v440_v40 = vmul.f32 %v2229_v38, %v2229_v38 }
  0xff   :  { %v315_v2 = vpop.xlane.xlu1 %314  ;;  %v464_v59 = vsel %vm264_vm14, %v432_v43, 0.0 }
 0x100   :  { %v384_v25 = vmul.f32 %v2224_v11, %v315_v2  ;;  %v488_v16 = vsel %vm264_vm14, %v440_v40, 0.0  ;;  %v339_v10 = vpop.xlane.xlu0 %338  ;;  %465 = vadd.xlane.f32.xlu2 %v464_v59 }
 0x101   :  { %489 = vadd.xlane.f32.xlu1 %v488_v16  ;;  %v392_v46 = vmul.f32 %v2224_v11, %v339_v10 }
 0x102   :  { %v2242_v47 = vsub.f32 %v2046_v50, %v384_v25 }
 0x103   :  { %v2246_v7 = vsub.f32 %v2050_v52, %v392_v46 }
 0x104   :  { %v448_v12 = vmul.f32 %v2242_v47, %v2242_v47 }
 0x105   :  { %v456_v43 = vmul.f32 %v2246_v7, %v2246_v7 }
 0x106   :  { %v512_v2 = vsel %vm264_vm14, %v448_v12, 0.0 }
 0x107   :  { %v318_v40 = vpop.xlane.xlu2 %317  ;;  %513 = vadd.xlane.f32.xlu0 %v512_v2  ;;  %v536_v50 = vsel %vm264_vm14, %v456_v43, 0.0 }
 0x108   :  { %v385_v59 = vmul.f32 %v2224_v11, %v318_v40  ;;  %v342_v25 = vpop.xlane.xlu1 %341  ;;  %v270_v16 = vpop.xlane.xlu0 %269  ;;  %537 = vadd.xlane.f32.xlu2 %v536_v50 }
 0x109   :  { %v369_v10 = vmul.f32 %v2224_v11, %v270_v16  ;;  %v393_v46 = vmul.f32 %v2224_v11, %v342_v25 }
 0x10a   :  { %v2256_v52 = vsub.f32 %v2060_v57, %v385_v59 }
 0x10b   :  { %v2261_v12 = vsub.f32 %v2052_v53, %v369_v10  ;;  %v2269_v50 = vsub.f32 %v2066_v60, %v393_v46 }
 0x10c   :  { %v449_v2 = vmul.f32 %v2256_v52, %v2256_v52 }
 0x10d   :  { %v433_v43 = vmul.f32 %v2261_v12, %v2261_v12 }
 0x10e   :  { %v515_v40 = vsel %vm264_vm14, %v449_v2, 0.0 }
 0x10f   :  { %516 = vadd.xlane.f32.xlu1 %v515_v40  ;;  %v467_v57 = vsel %vm264_vm14, %v433_v43, 0.0  ;;  %v457_v40 = vmul.f32 %v2269_v50, %v2269_v50 }
 0x110   :  { %v345_v59 = vpop.xlane.xlu2 %344  ;;  %v273_v16 = vpop.xlane.xlu1 %272  ;;  %468 = vadd.xlane.f32.xlu0 %v467_v57 }
 0x111   :  { %v370_v53 = vmul.f32 %v2224_v11, %v273_v16  ;;  %v294_v25 = vpop.xlane.xlu0 %293  ;;  %v394_v49 = vmul.f32 %v2224_v11, %v345_v59 }
 0x112   :  { %v377_v10 = vmul.f32 %v2224_v11, %v294_v25 }
 0x113   :  { %v2276_v2 = vsub.f32 %v2068_v61, %v370_v53  ;;  %v2288_v57 = vsub.f32 %v2078_v3, %v394_v49  ;;  %v539_v61 = vsel %vm264_vm14, %v457_v40, 0.0 }
 0x114   :  { %v2281_v60 = vsub.f32 %v2058_v56, %v377_v10 }
 0x115   :  { %v434_v46 = vmul.f32 %v2276_v2, %v2276_v2  ;;  %v458_v49 = vmul.f32 %v2288_v57, %v2288_v57 }
 0x116   :  { %v441_v43 = vmul.f32 %v2281_v60, %v2281_v60 }
 0x117   :  { %v470_v59 = vsel %vm264_vm14, %v434_v46, 0.0 }
 0x118   :  { %v300_v16 = vpop.xlane.xlu2 %299  ;;  %v297_v53 = vpop.xlane.xlu1 %296  ;;  %471 = vadd.xlane.f32.xlu1 %v470_v59  ;;  %v491_v25 = vsel %vm264_vm14, %v441_v43, 0.0  ;;  %540 = vadd.xlane.f32.xlu0 %v539_v61  ;;  %v542_v61 = vsel %vm264_vm14, %v458_v49, 0.0 }
 0x119   :  { %v378_v56 = vmul.f32 %v2224_v11, %v297_v53  ;;  %v321_v10 = vpop.xlane.xlu0 %320  ;;  %492 = vadd.xlane.f32.xlu2 %v491_v25  ;;  %v379_v37 = vmul.f32 %v2224_v11, %v300_v16 }
 0x11a   :  { %v386_v51 = vmul.f32 %v2224_v11, %v321_v10 }
 0x11b   :  { %v2297_v3 = vsub.f32 %v2072_v63, %v378_v56  ;;  %v2309_v59 = vsub.f32 %v2090_v9, %v379_v37 }
 0x11c   :  { %v2302_v40 = vsub.f32 %v2082_v5, %v386_v51 }
 0x11d   :  { %v442_v46 = vmul.f32 %v2297_v3, %v2297_v3  ;;  %v443_v9 = vmul.f32 %v2309_v59, %v2309_v59 }
 0x11e   :  { %v450_v43 = vmul.f32 %v2302_v40, %v2302_v40 }
 0x11f   :  { %v494_v63 = vsel %vm264_vm14, %v442_v46, 0.0  ;;  %v497_v49 = vsel %vm264_vm14, %v443_v9, 0.0 }
 0x120   :  { %v276_v16 = vpop.xlane.xlu1 %275  ;;  %v279_v53 = vpop.xlane.xlu2 %278  ;;  %543 = vadd.xlane.f32.xlu1 %v542_v61  ;;  %v518_v25 = vsel %vm264_vm14, %v450_v43, 0.0  ;;  %495 = vadd.xlane.f32.xlu0 %v494_v63 }
 0x121   :  { %v371_v5 = vmul.f32 %v2224_v11, %v276_v16  ;;  %v348_v51 = vpop.xlane.xlu0 %347  ;;  %519 = vadd.xlane.f32.xlu2 %v518_v25 }
 0x122   :  { %v395_v37 = vmul.f32 %v2224_v11, %v348_v51 }
 0x123   :  { %v2316_v56 = vsub.f32 %v2088_v8, %v371_v5  ;;  %v372_v5 = vmul.f32 %v2224_v11, %v279_v53 }
 0x124   :  { %v2325_v46 = vsub.f32 %v2106_v18, %v395_v37 }
 0x125   :  { %v435_v10 = vmul.f32 %v2316_v56, %v2316_v56 }
 0x126   :  { %3730 = vst [vmem:[#allocation21_spill] sm:$0xff] %v2325_v46  ;;  %v459_v37 = vmul.f32 %v2325_v46, %v2325_v46 }
 0x127   :  { %v473_v63 = vsel %vm264_vm14, %v435_v10, 0.0 }
 0x128   :  { %v324_v43 = vpop.xlane.xlu1 %323  ;;  %v327_v61 = vpop.xlane.xlu2 %326  ;;  %498 = vadd.xlane.f32.xlu1 %v497_v49 }
 0x129   :  { %v387_v8 = vmul.f32 %v2224_v11, %v324_v43  ;;  %v388_v16 = vmul.f32 %v2224_v11, %v327_v61  ;;  %v303_v25 = vpop.xlane.xlu0 %302  ;;  %474 = vadd.xlane.f32.xlu2 %v473_v63  ;;  %v2345_v43 = vsub.f32 %v2104_v17, %v372_v5 }
 0x12a   :  { %v380_v18 = vmul.f32 %v2224_v11, %v303_v25 }
 0x12b   :  { %v2332_v51 = vsub.f32 %v2100_v14, %v387_v8  ;;  %v2335_v9 = vsub.f32 %v2118_v24, %v388_v16  ;;  %v545_v8 = vsel %vm264_vm14, %v459_v37, 0.0 }
 0x12c   :  { %v2350_v24 = vsub.f32 %v2122_v26, %v380_v18 }
 0x12d   :  { %v451_v10 = vmul.f32 %v2332_v51, %v2332_v51  ;;  %v452_v49 = vmul.f32 %v2335_v9, %v2335_v9 }
 0x12e   :  { %v444_v18 = vmul.f32 %v2350_v24, %v2350_v24 }
 0x12f   :  { %v521_v14 = vsel %vm264_vm14, %v451_v10, 0.0  ;;  %v524_v53 = vsel %vm264_vm14, %v452_v49, 0.0  ;;  %v436_v10 = vmul.f32 %v2345_v43, %v2345_v43 }
 0x130   :  { %v351_v61 = vpop.xlane.xlu1 %350  ;;  %v282_v63 = vpop.xlane.xlu2 %281  ;;  %522 = vadd.xlane.f32.xlu0 %v521_v14  ;;  %525 = vadd.xlane.f32.xlu1 %v524_v53 }
 0x131   :  { %v373_v16 = vmul.f32 %v2224_v11, %v282_v63  ;;  %v330_v25 = vpop.xlane.xlu0 %329  ;;  %546 = vadd.xlane.f32.xlu2 %v545_v8  ;;  %v396_v17 = vmul.f32 %v2224_v11, %v351_v61  ;;  %v476_v14 = vsel %vm264_vm14, %v436_v10, 0.0  ;;  %v500_v8 = vsel %vm264_vm14, %v444_v18, 0.0 }
 0x132   :  { %v389_v26 = vmul.f32 %v2224_v11, %v330_v25 }
 0x133   :  { %v2356_v5 = vsub.f32 %v2136_v33, %v373_v16  ;;  %v2366_v49 = vsub.f32 %v2134_v32, %v396_v17 }
 0x134   :  { %v2371_v33 = vsub.f32 %v2138_v34, %v389_v26 }
 0x135   :  { %v437_v37 = vmul.f32 %v2356_v5, %v2356_v5  ;;  %v460_v10 = vmul.f32 %v2366_v49, %v2366_v49 }
 0x136   :  { %v453_v26 = vmul.f32 %v2371_v33, %v2371_v33 }
 0x137   :  { %v479_v53 = vsel %vm264_vm14, %v437_v37, 0.0 }
 0x138   :  { %v306_v61 = vpop.xlane.xlu1 %305  ;;  %v354_v63 = vpop.xlane.xlu2 %353  ;;  %477 = vadd.xlane.f32.xlu0 %v476_v14  ;;  %480 = vadd.xlane.f32.xlu1 %v479_v53  ;;  %v548_v14 = vsel %vm264_vm14, %v460_v10, 0.0 }
 0x139   :  { %v397_v16 = vmul.f32 %v2224_v11, %v354_v63  ;;  %501 = vadd.xlane.f32.xlu2 %v500_v8  ;;  %v285_v25 = vpop.xlane.xlu0 %284  ;;  %v381_v32 = vmul.f32 %v2224_v11, %v306_v61  ;;  %v527_v8 = vsel %vm264_vm14, %v453_v26, 0.0 }
 0x13a   :  { %v374_v34 = vmul.f32 %v2224_v11, %v285_v25 }
 0x13b   :  { %v2377_v17 = vsub.f32 %v2154_v44, %v397_v16  ;;  %v2387_v37 = vsub.f32 %v2150_v42, %v381_v32 }
 0x13c   :  { %v2392_v44 = vsub.f32 %v2156_v45, %v374_v34 }
 0x13d   :  { %v461_v18 = vmul.f32 %v2377_v17, %v2377_v17  ;;  %v445_v10 = vmul.f32 %v2387_v37, %v2387_v37 }
 0x13e   :  { %v438_v34 = vmul.f32 %v2392_v44, %v2392_v44 }
 0x13f   :  { %v551_v53 = vsel %vm264_vm14, %v461_v18, 0.0 }
 0x140   :  { %v333_v61 = vpop.xlane.xlu1 %332  ;;  %v309_v63 = vpop.xlane.xlu2 %308  ;;  %549 = vadd.xlane.f32.xlu0 %v548_v14  ;;  %552 = vadd.xlane.f32.xlu1 %v551_v53  ;;  %v503_v14 = vsel %vm264_vm14, %v445_v10, 0.0 }
 0x141   :  { %v382_v16 = vmul.f32 %v2224_v11, %v309_v63  ;;  %528 = vadd.xlane.f32.xlu2 %v527_v8  ;;  %v357_v25 = vpop.xlane.xlu0 %356  ;;  %v390_v42 = vmul.f32 %v2224_v11, %v333_v61  ;;  %v482_v8 = vsel %vm264_vm14, %v438_v34, 0.0 }
 0x142   :  { %v398_v45 = vmul.f32 %v2224_v11, %v357_v25 }
 0x143   :  { %v2398_v32 = vsub.f32 %v2170_v62, %v382_v16  ;;  %v2408_v18 = vsub.f32 %v2166_v58, %v390_v42 }
 0x144   :  { %v2413_v62 = vsub.f32 %v2174_v4, %v398_v45 }
 0x145   :  { %v446_v26 = vmul.f32 %v2398_v32, %v2398_v32  ;;  %3731 = vst [vmem:[#allocation22_spill] sm:$0xff] %v2408_v18  ;;  %v454_v10 = vmul.f32 %v2408_v18, %v2408_v18 }
 0x146   :  { %3732 = vst [vmem:[#allocation23_spill] sm:$0xff] %v2413_v62  ;;  %v462_v45 = vmul.f32 %v2413_v62, %v2413_v62 }
 0x147   :  { %v506_v53 = vsel %vm264_vm14, %v446_v26, 0.0 }
 0x148   :  { %v336_v61 = vpop.xlane.xlu2 %335  ;;  %504 = vadd.xlane.f32.xlu0 %v503_v14  ;;  %507 = vadd.xlane.f32.xlu1 %v506_v53  ;;  %v288_v63 = vpop.xlane.xlu1 %287  ;;  %v530_v14 = vsel %vm264_vm14, %v454_v10, 0.0 }
 0x149   :  { %v391_v16 = vmul.f32 %v2224_v11, %v336_v61  ;;  %483 = vadd.xlane.f32.xlu2 %v482_v8  ;;  %v312_v25 = vpop.xlane.xlu0 %311  ;;  %v375_v42 = vmul.f32 %v2224_v11, %v288_v63  ;;  %v554_v63 = vsel %vm264_vm14, %v462_v45, 0.0  ;;  %v1652_v45 = vunpack.c.h.bf16 %v2023_v36 }
 0x14a   :  { %v383_v4 = vmul.f32 %v2224_v11, %v312_v25 }
 0x14b   :  { %v2418_v58 = vsub.f32 %v2186_v22, %v391_v16  ;;  %v2429_v26 = vsub.f32 %v2184_v21, %v375_v42  ;;  %vm1167_vm1 = vcmp.gt.f32.partialorder %v1652_v45, 0.5 }
 0x14c   :  { %v2434_v53 = vsub.f32 %v2188_v23, %v383_v4 }
 0x14d   :  { %3733 = vst [vmem:[#allocation24_spill] sm:$0xff] %v2418_v58  ;;  %v455_v34 = vmul.f32 %v2418_v58, %v2418_v58  ;;  %v439_v16 = vmul.f32 %v2429_v26, %v2429_v26 }
 0x14e   :  { %3734 = vst [vmem:[#allocation25_spill] sm:$0xff] %v2429_v26  ;;  %v447_v21 = vmul.f32 %v2434_v53, %v2434_v53 }
 0x14f   :  { %v533_v22 = vsel %vm264_vm14, %v455_v34, 0.0  ;;  %3735 = vst [vmem:[#allocation26_spill] sm:$0xff] %v2434_v53  ;;  %v485_v23 = vsel %vm264_vm14, %v439_v16, 0.0  ;;  %v3737_v34 = vmov 0  }
 0x150   :  { %531 = vadd.xlane.f32.xlu0 %v530_v14  ;;  %534 = vadd.xlane.f32.xlu1 %v533_v22  ;;  %v360_v61 = vpop.xlane.xlu1 %359  ;;  %v509_v42 = vsel %vm264_vm14, %v447_v21, 0.0  ;;  %v1199_v14 = vsel %vm1167_vm1, 1, %v3737_v34  ;;  %v1660_v22 = vunpack.c.h.bf16 %v1975_v15 }
 0x151   :  { %555 = vadd.xlane.f32.xlu2 %v554_v63  ;;  %v399_v8 = vmul.f32 %v2224_v11, %v360_v61 }
 0x152   :  { %vm1171_vm3 = vcmp.gt.f32.partialorder %v1660_v22, 0.5 }
 0x153   :  { %v2443_v25 = vsub.f32 %v2200_v39, %v399_v8  ;;  %v1668_v39 = vunpack.c.h.bf16 %v2032_v41  ;;  %v1203_v63 = vsel %vm1171_vm3, 1, %v3737_v34 }
 0x155   :  { %3736 = vst [vmem:[#allocation27_spill] sm:$0xff] %v2443_v25  ;;  %v463_v10 = vmul.f32 %v2443_v25, %v2443_v25  ;;  %vm1175_vm2 = vcmp.gt.f32.partialorder %v1668_v39, 0.5 }
 0x156   :  { %v1207_v61 = vsel %vm1175_vm2, 1, %v3737_v34 }
 0x157   :  { %v557_v4 = vsel %vm264_vm14, %v463_v10, 0.0 }
 0x158   :  { %486 = vadd.xlane.f32.xlu0 %v485_v23 }
 0x159   :  { %510 = vadd.xlane.f32.xlu2 %v509_v42 }
 0x160   :  { %558 = vadd.xlane.f32.xlu0 %v557_v4 }
 0x169   :  { %1278 = vperm.xlu1 %1693, %v1199_v14  }
 0x171   :  { %1302 = vperm.xlu2 %1694, %v1207_v61  }
 0x173   :  { %v466_v8 = vpop.xlane.xlu2 %465 }
 0x174   :  { %v490_v16 = vpop.xlane.xlu1 %489  ;;  %1290 = vperm.xlu0 %1695, %v1203_v63   ;;  %v560_v36 = vmul.f32 %v466_v8, %v2224_v11 }
 0x175   :  { %v568_v21 = vmul.f32 %v490_v16, %v2224_v11 }
 0x176   :  { %v592_v23 = vadd.f32 1e-05, %v560_v36 }
 0x177   :  { %v600_v42 = vadd.f32 1e-05, %v568_v21 }
 0x178   :  { %1700 = vrsqrt.f32 %v592_v23  ;;  %vm630_vm7 = vweird.f32 %v592_v23 }
 0x179   :  { %1702 = vrsqrt.f32 %v600_v42  ;;  %vm710_vm6 = vweird.f32 %v600_v42 }
 0x17a   :  { %v514_v41 = vpop.xlane.xlu0 %513 }
 0x17b   :  { %v576_v15 = vmul.f32 %v514_v41, %v2224_v11  ;;  %v538_v10 = vpop.xlane.xlu2 %537 }
 0x17c   :  { %v584_v45 = vmul.f32 %v538_v10, %v2224_v11 }
 0x17d   :  { %v2459_v4 = vadd.f32 1e-05, %v576_v15 }
 0x17e   :  { %v1701_v34 = vpop.eup %1700  ;;  %v2463_v14 = vadd.f32 1e-05, %v584_v45 }
 0x17f   :  { %1704 = vrsqrt.f32 %v2459_v4  ;;  %v1703_v39 = vpop.eup %1702  ;;  %v625_v22 = vmul.f32 %v1701_v34, %v592_v23  ;;  %vm631_vm5 = vweird.f32 %v1701_v34  ;;  %vm790_vm11 = vweird.f32 %v2459_v4 }
 0x180   :  { %v705_v61 = vmul.f32 %v1703_v39, %v600_v42  ;;  %1706 = vrsqrt.f32 %v2463_v14  ;;  %vm711_vm4 = vweird.f32 %v1703_v39  ;;  %vm632_vm9 = vmor %vm630_vm7, %vm631_vm5  ;;  %vm870_vm15 = vweird.f32 %v2463_v14 }
 0x181   :  { %v626_v63 = vmul.f32 %v1701_v34, %v625_v22  ;;  %vm712_vm8 = vmor %vm710_vm6, %vm711_vm4  ;;  %vm1312_vm4 = vcmp.eq.s32.totalorder %v2140_v35, 1 }
 0x182   :  { %v517_v8 = vpop.xlane.xlu1 %516  ;;  %v706_v16 = vmul.f32 %v1703_v39, %v705_v61 }
 0x183   :  { %v577_v36 = vmul.f32 %v517_v8, %v2224_v11  ;;  %v627_v21 = vmul.f32 0.5, %v626_v63  ;;  %v469_v41 = vpop.xlane.xlu0 %468 }
 0x184   :  { %v707_v10 = vmul.f32 0.5, %v706_v16  ;;  %v561_v45 = vmul.f32 %v469_v41, %v2224_v11 }
 0x185   :  { %v2467_v15 = vpop.eup %1704  ;;  %v2469_v25 = vadd.f32 1e-05, %v577_v36  ;;  %v628_v46 = vsub.f32 1.5, %v627_v21 }
 0x186   :  { %v785_v53 = vmul.f32 %v2467_v15, %v2459_v4  ;;  %v2474_v58 = vpop.eup %1706  ;;  %v708_v22 = vsub.f32 1.5, %v707_v10  ;;  %v2477_v61 = vadd.f32 1e-05, %v561_v45  ;;  %vm791_vm10 = vweird.f32 %v2467_v15 }
 0x187   :  { %1708 = vrsqrt.f32 %v2469_v25  ;;  %v629_v63 = vmul.f32 %v1701_v34, %v628_v46  ;;  %v865_v16 = vmul.f32 %v2474_v58, %v2463_v14  ;;  %v2487_v46 = vld [vmem:[%s3679_s2] ss:$0 sm:$0xff]  ;;  %vm871_vm0 = vweird.f32 %v2474_v58  ;;  %vm2515_vm13 = vmor %vm790_vm11, %vm791_vm10 }
 0x188   :  { %v786_v8 = vmul.f32 %v2467_v15, %v785_v53  ;;  %v709_v36 = vmul.f32 %v1703_v39, %v708_v22  ;;  %1710 = vrsqrt.f32 %v2477_v61  ;;  %vm800_vm1 = vweird.f32 %v2469_v25  ;;  %vm2541_vm3 = vmor %vm870_vm15, %vm871_vm0 }
 0x189   :  { %v866_v41 = vmul.f32 %v2474_v58, %v865_v16  ;;  %v633_v53 = vsel %vm632_vm9, %v1701_v34, %v629_v63  ;;  %vm640_vm5 = vweird.f32 %v2477_v61 }
 0x18a   :  { %v787_v21 = vmul.f32 0.5, %v786_v8  ;;  %v713_v10 = vsel %vm712_vm8, %v1703_v39, %v709_v36  ;;  %v944_v39 = vmul.f32 %v633_v53, %v2232_v13 }
 0x18b   :  { %v952_v45 = vmul.f32 %v713_v10, %v2229_v38  ;;  %v472_v26 = vpop.xlane.xlu1 %471  ;;  %v541_v22 = vpop.xlane.xlu0 %540  ;;  %v867_v20 = vmul.f32 0.5, %v866_v41  ;;  %v2500_v38 = vld [vmem:[%s3680_s3] ss:$0 sm:$0xff] }
 0x18c   :  { %v788_v30 = vsub.f32 1.5, %v787_v21  ;;  %v562_v23 = vmul.f32 %v472_v26, %v2224_v11  ;;  %v493_v8 = vpop.xlane.xlu2 %492  ;;  %v585_v26 = vmul.f32 %v541_v22, %v2224_v11 }
 0x18d   :  { %v1709_v42 = vpop.eup %1708  ;;  %v988_v34 = vmul.f32 %v2487_v46, %v952_v45  ;;  %v569_v21 = vmul.f32 %v493_v8, %v2224_v11  ;;  %v868_v10 = vsub.f32 1.5, %v867_v20  ;;  %v980_v45 = vmul.f32 %v2487_v46, %v944_v39 }
 0x18e   :  { %v795_v16 = vmul.f32 %v1709_v42, %v2469_v25  ;;  %v2492_v62 = vpop.eup %1710  ;;  %v2495_v36 = vadd.f32 1e-05, %v562_v23  ;;  %v789_v41 = vmul.f32 %v2467_v15, %v788_v30  ;;  %vm801_vm12 = vweird.f32 %v1709_v42 }
 0x18f   :  { %v635_v13 = vmul.f32 %v2492_v62, %v2477_v61  ;;  %v1024_v30 = vadd.f32 %v2500_v38, %v988_v34  ;;  %v2519_v8 = vadd.f32 1e-05, %v569_v21  ;;  %v2521_v4 = vadd.f32 1e-05, %v585_v26  ;;  %vm802_vm2 = vmor %vm800_vm1, %vm801_vm12 }
 0x190   :  { %v796_v63 = vmul.f32 %v1709_v42, %v795_v16  ;;  %1712 = vrsqrt.f32 %v2495_v36  ;;  %v793_v39 = vsel %vm2515_vm13, %v2467_v15, %v789_v41  ;;  %v2532_v21 = vadd.f32 %v2500_v38, %v980_v45 }
 0x191   :  { %v636_v22 = vmul.f32 %v2492_v62, %v635_v13  ;;  %1714 = vrsqrt.f32 %v2519_v8  ;;  %vm641_vm6 = vweird.f32 %v2492_v62  ;;  %vm650_vm7 = vweird.f32 %v2495_v36 }
 0x192   :  { %v797_v53 = vmul.f32 0.5, %v796_v63  ;;  %v869_v63 = vmul.f32 %v2474_v58, %v868_v10  ;;  %1716 = vrsqrt.f32 %v2521_v4  ;;  %v960_v10 = vmul.f32 %v793_v39, %v2242_v47  ;;  %vm2581_vm8 = vmor %vm640_vm5, %vm641_vm6 }
 0x193   :  { %v544_v16 = vpop.xlane.xlu1 %543  ;;  %v637_v18 = vmul.f32 0.5, %v636_v22  ;;  %v496_v28 = vpop.xlane.xlu0 %495  ;;  %vm720_vm10 = vweird.f32 %v2519_v8  ;;  %vm880_vm12 = vweird.f32 %v2521_v4 }
 0x194   :  { %v798_v20 = vsub.f32 1.5, %v797_v53  ;;  %v586_v13 = vmul.f32 %v544_v16, %v2224_v11  ;;  %v520_v34 = vpop.xlane.xlu2 %519  ;;  %v570_v45 = vmul.f32 %v496_v28, %v2224_v11  ;;  %v873_v22 = vsel %vm2541_vm3, %v2474_v58, %v869_v63 }
 0x195   :  { %v638_v15 = vsub.f32 1.5, %v637_v18  ;;  %v578_v53 = vmul.f32 %v520_v34, %v2224_v11  ;;  %v1056_v18 = vmax.f32 %v1024_v30, 0.0  ;;  %v996_v16 = vmul.f32 %v2487_v46, %v960_v10 }
 0x196   :  { %v799_v27 = vmul.f32 %v1709_v42, %v798_v20  ;;  %v2536_v26 = vadd.f32 1e-05, %v586_v13  ;;  %v1713_v41 = vpop.eup %1712 }
 0x197   :  { %v645_v47 = vmul.f32 %v1713_v41, %v2495_v36  ;;  %v2554_v20 = vadd.f32 1e-05, %v578_v53  ;;  %v2561_v30 = vpop.eup %1714  ;;  %v2574_v14 = vsel %vm1312_vm4, -inf, %v1056_v18  ;;  %vm651_vm9 = vweird.f32 %v1713_v41 }
 0x198   :  { %v803_v25 = vsel %vm802_vm2, %v1709_v42, %v799_v27  ;;  %1718 = vrsqrt.f32 %v2536_v26  ;;  %v2556_v27 = vadd.f32 1e-05, %v570_v45  ;;  %v639_v42 = vmul.f32 %v2492_v62, %v638_v15  ;;  %v2567_v63 = vpop.eup %1716  ;;  %3742 = vst [vmem:[#allocation28_spill] sm:$0xff] %v2574_v14  ;;  %vm652_vm11 = vmor %vm650_vm7, %vm651_vm9 }
 0x199   :  { %v961_v23 = vmul.f32 %v803_v25, %v2256_v52  ;;  %v646_v28 = vmul.f32 %v1713_v41, %v645_v47  ;;  %v968_v52 = vmul.f32 %v873_v22, %v2246_v7  ;;  %1720 = vrsqrt.f32 %v2554_v20 }
 0x19a   :  { %v715_v34 = vmul.f32 %v2561_v30, %v2519_v8  ;;  %v875_v25 = vmul.f32 %v2567_v63, %v2521_v4  ;;  %1722 = vrsqrt.f32 %v2556_v27  ;;  %v643_v35 = vsel %vm2581_vm8, %v2492_v62, %v639_v42 }
 0x19b   :  { %v499_v39 = vpop.xlane.xlu1 %498  ;;  %v647_v13 = vmul.f32 0.5, %v646_v28  ;;  %v997_v10 = vmul.f32 %v2487_v46, %v961_v23  ;;  %v2596_v22 = vadd.f32 %v2500_v38, %v996_v16  ;;  %v2599_v47 = vmul.f32 %v2487_v46, %v968_v52 }
 0x19c   :  { %v475_v15 = vpop.xlane.xlu2 %474  ;;  %v716_v45 = vmul.f32 %v2561_v30, %v715_v34  ;;  %v571_v18 = vmul.f32 %v499_v39, %v2224_v11  ;;  %v876_v23 = vmul.f32 %v2567_v63, %v875_v25  ;;  %v945_v16 = vmul.f32 %v643_v35, %v2261_v12 }
 0x19d   :  { %v648_v53 = vsub.f32 1.5, %v647_v13  ;;  %3745 = vst [vmem:[#allocation29_spill] sm:$0xff] %v2599_v47  ;;  %v563_v28 = vmul.f32 %v475_v15, %v2224_v11  ;;  %v2609_v39 = vadd.f32 %v2500_v38, %v997_v10  ;;  %vm721_vm0 = vweird.f32 %v2561_v30 }
 0x19e   :  { %v2593_v61 = vpop.eup %1718  ;;  %v717_v7 = vmul.f32 0.5, %v716_v45  ;;  %v877_v52 = vmul.f32 0.5, %v876_v23  ;;  %v2615_v13 = vadd.f32 1e-05, %v571_v18  ;;  %vm810_vm13 = vweird.f32 %v2554_v20  ;;  %vm2640_vm1 = vmor %vm720_vm10, %vm721_vm0 }
 0x19f   :  { %v649_v58 = vmul.f32 %v1713_v41, %v648_v53  ;;  %v885_v62 = vmul.f32 %v2593_v61, %v2536_v26  ;;  %v2606_v42 = vpop.eup %1720  ;;  %v2624_v12 = vadd.f32 1e-05, %v563_v28  ;;  %vm730_vm15 = vweird.f32 %v2556_v27 }
 0x1a0   :  { %v718_v15 = vsub.f32 1.5, %v717_v7  ;;  %v805_v53 = vmul.f32 %v2606_v42, %v2554_v20  ;;  %v2620_v45 = vpop.eup %1722  ;;  %v878_v47 = vsub.f32 1.5, %v877_v52  ;;  %1724 = vrsqrt.f32 %v2615_v13 }
 0x1a1   :  { %v653_v34 = vsel %vm652_vm11, %v1713_v41, %v649_v58  ;;  %v886_v25 = vmul.f32 %v2593_v61, %v885_v62  ;;  %v725_v58 = vmul.f32 %v2620_v45, %v2556_v27  ;;  %vm881_vm2 = vweird.f32 %v2567_v63 }
 0x1a2   :  { %v946_v10 = vmul.f32 %v653_v34, %v2276_v2  ;;  %v719_v18 = vmul.f32 %v2561_v30, %v718_v15  ;;  %v806_v41 = vmul.f32 %v2606_v42, %v805_v53  ;;  %v981_v2 = vmul.f32 %v2487_v46, %v945_v16  ;;  %vm2664_vm4 = vmor %vm880_vm12, %vm881_vm2 }
 0x1a3   :  { %v523_v36 = vpop.xlane.xlu0 %522  ;;  %v526_v35 = vpop.xlane.xlu1 %525  ;;  %v887_v7 = vmul.f32 0.5, %v886_v25  ;;  %v726_v62 = vmul.f32 %v2620_v45, %v725_v58  ;;  %v879_v16 = vmul.f32 %v2567_v63, %v878_v47  ;;  %vm890_vm3 = vweird.f32 %v2536_v26 }
 0x1a4   :  { %v807_v28 = vmul.f32 0.5, %v806_v41  ;;  %v982_v52 = vmul.f32 %v2487_v46, %v946_v10  ;;  %1726 = vrsqrt.f32 %v2624_v12  ;;  %v723_v25 = vsel %vm2640_vm1, %v2561_v30, %v719_v18 }
 0x1a5   :  { %v727_v8 = vmul.f32 0.5, %v726_v62  ;;  %v2655_v41 = vadd.f32 %v2500_v38, %v981_v2  ;;  %v888_v47 = vsub.f32 1.5, %v887_v7  ;;  %v579_v58 = vmul.f32 %v523_v36, %v2224_v11  ;;  %v547_v2 = vpop.xlane.xlu2 %546 }
 0x1a6   :  { %v808_v53 = vsub.f32 1.5, %v807_v28  ;;  %v2652_v10 = vpop.eup %1724  ;;  %v2660_v23 = vsel %vm264_vm14, %v2574_v14, -inf  ;;  %vm811_vm5 = vweird.f32 %v2606_v42  ;;  %vm731_vm6 = vweird.f32 %v2620_v45 }
 0x1a7   :  { %v728_v18 = vsub.f32 1.5, %v727_v8  ;;  %v2672_v36 = vadd.f32 %v2500_v38, %v982_v52  ;;  %v953_v7 = vmul.f32 %v723_v25, %v2281_v60  ;;  %v883_v4 = vsel %vm2664_vm4, %v2567_v63, %v879_v16  ;;  %vm2693_vm8 = vmor %vm810_vm13, %vm811_vm5 }
 0x1a8   :  { %v809_v30 = vmul.f32 %v2606_v42, %v808_v53  ;;  %v735_v28 = vmul.f32 %v2652_v10, %v2615_v13  ;;  %vm891_vm7 = vweird.f32 %v2593_v61  ;;  %v2682_v8 = vadd.f32 1e-05, %v579_v58  ;;  %vm2707_vm10 = vmor %vm730_vm15, %vm731_vm6 }
 0x1a9   :  { %v729_v53 = vmul.f32 %v2620_v45, %v728_v18  ;;  %v580_v52 = vmul.f32 %v526_v35, %v2224_v11  ;;  %v889_v15 = vmul.f32 %v2593_v61, %v888_v47  ;;  %vm740_vm9 = vweird.f32 %v2615_v13  ;;  %vm2723_vm11 = vmor %vm890_vm3, %vm891_vm7 }
 0x1aa   :  { %v2685_v14 = vpop.eup %1726  ;;  %v736_v16 = vmul.f32 %v2652_v10, %v735_v28  ;;  %v969_v35 = vmul.f32 %v883_v4, %v2269_v50  ;;  %v813_v25 = vsel %vm2693_vm8, %v2606_v42, %v809_v30  ;;  %1728 = vrsqrt.f32 %v2682_v8 }
 0x1ab   :  { %v478_v62 = vpop.xlane.xlu0 %477  ;;  %v481_v34 = vpop.xlane.xlu1 %480  ;;  %v655_v47 = vmul.f32 %v2685_v14, %v2624_v12  ;;  %v989_v50 = vmul.f32 %v2487_v46, %v953_v7  ;;  %v733_v42 = vsel %vm2707_vm10, %v2620_v45, %v729_v53  ;;  %v2728_v4 = vadd.f32 1e-05, %v580_v52 }
 0x1ac   :  { %v737_v30 = vmul.f32 0.5, %v736_v16  ;;  %v587_v28 = vmul.f32 %v547_v2, %v2224_v11  ;;  %v564_v7 = vmul.f32 %v478_v62, %v2224_v11  ;;  %v893_v45 = vsel %vm2723_vm11, %v2593_v61, %v889_v15 }
 0x1ad   :  { %v656_v18 = vmul.f32 %v2685_v14, %v655_v47  ;;  %v962_v53 = vmul.f32 %v813_v25, %v2302_v40  ;;  %v565_v26 = vmul.f32 %v481_v34, %v2224_v11  ;;  %v954_v16 = vmul.f32 %v733_v42, %v2297_v3  ;;  %v502_v34 = vpop.xlane.xlu2 %501 }
 0x1ae   :  { %v738_v63 = vsub.f32 1.5, %v737_v30  ;;  %1730 = vrsqrt.f32 %v2728_v4  ;;  %v2739_v52 = vadd.f32 1e-05, %v587_v28  ;;  %v2742_v2 = vadd.f32 %v2500_v38, %v989_v50 }
 0x1af   :  { %v657_v20 = vmul.f32 0.5, %v656_v18  ;;  %vm741_vm0 = vweird.f32 %v2652_v10  ;;  %v2746_v61 = vadd.f32 1e-05, %v564_v7  ;;  %vm661_vm12 = vweird.f32 %v2685_v14 }
 0x1b0   :  { %v739_v62 = vmul.f32 %v2652_v10, %v738_v63  ;;  %v2748_v40 = vpop.eup %1728  ;;  %1732 = vrsqrt.f32 %v2739_v52  ;;  %v2752_v3 = vadd.f32 1e-05, %v565_v26  ;;  %v970_v25 = vmul.f32 %v893_v45, %v2288_v57  ;;  %vm2767_vm15 = vmor %vm740_vm9, %vm741_vm0 }
 0x1b1   :  { %v658_v15 = vsub.f32 1.5, %v657_v20  ;;  %v998_v47 = vmul.f32 %v2487_v46, %v962_v53  ;;  %vm660_vm13 = vweird.f32 %v2624_v12  ;;  %v815_v50 = vmul.f32 %v2748_v40, %v2682_v8 }
 0x1b2   :  { %v2760_v27 = vmul.f32 %v2487_v46, %v969_v35  ;;  %v990_v18 = vmul.f32 %v2487_v46, %v954_v16  ;;  %1734 = vrsqrt.f32 %v2746_v61  ;;  %v743_v28 = vsel %vm2767_vm15, %v2652_v10, %v739_v62  ;;  %vm2778_vm1 = vmor %vm660_vm13, %vm661_vm12 }
 0x1b3   :  { %v550_v42 = vpop.xlane.xlu0 %549  ;;  %v553_v30 = vpop.xlane.xlu1 %552  ;;  %v659_v12 = vmul.f32 %v2685_v14, %v658_v15  ;;  %v816_v13 = vmul.f32 %v2748_v40, %v815_v50  ;;  %1736 = vrsqrt.f32 %v2752_v3  ;;  %v572_v7 = vmul.f32 %v502_v34, %v2224_v11 }
 0x1b4   :  { %v2785_v45 = vpop.eup %1730  ;;  %v588_v63 = vmul.f32 %v550_v42, %v2224_v11  ;;  %v589_v26 = vmul.f32 %v553_v30, %v2224_v11  ;;  %v2794_v16 = vmul.f32 %v2487_v46, %v970_v25  ;;  %v2797_v20 = vadd.f32 %v2500_v38, %v998_v47 }
 0x1b5   :  { %v663_v10 = vsel %vm2778_vm1, %v2685_v14, %v659_v12  ;;  %v817_v62 = vmul.f32 0.5, %v816_v13  ;;  %v825_v15 = vmul.f32 %v2785_v45, %v2728_v4  ;;  %v2804_v50 = vadd.f32 %v2500_v38, %v990_v18 }
 0x1b6   :  { %3760 = vst [vmem:[#allocation30_spill] sm:$0xff] %v2794_v16  ;;  %v2801_v34 = vpop.eup %1732  ;;  %v955_v14 = vmul.f32 %v743_v28, %v2309_v59  ;;  %v947_v42 = vmul.f32 %v663_v10, %v2316_v56  ;;  %v2808_v30 = vadd.f32 1e-05, %v572_v7  ;;  %v2813_v12 = vadd.f32 1e-05, %v588_v63 }
 0x1b7   :  { %v818_v25 = vsub.f32 1.5, %v817_v62  ;;  %v826_v57 = vmul.f32 %v2785_v45, %v825_v15  ;;  %v895_v47 = vmul.f32 %v2801_v34, %v2739_v52  ;;  %vm820_vm2 = vweird.f32 %v2682_v8  ;;  %v529_v15 = vpop.xlane.xlu2 %528 }
 0x1b8   :  { %v2815_v35 = vpop.eup %1734  ;;  %vm821_vm3 = vweird.f32 %v2748_v40  ;;  %1738 = vrsqrt.f32 %v2808_v30  ;;  %v2820_v59 = vadd.f32 1e-05, %v589_v26  ;;  %v991_v63 = vmul.f32 %v2487_v46, %v955_v14 }
 0x1b9   :  { %v2822_v56 = vpop.eup %1736  ;;  %v819_v28 = vmul.f32 %v2748_v40, %v818_v25  ;;  %v827_v13 = vmul.f32 0.5, %v826_v57  ;;  %v896_v7 = vmul.f32 %v2801_v34, %v895_v47  ;;  %v665_v62 = vmul.f32 %v2815_v35, %v2746_v61  ;;  %vm2836_vm4 = vmor %vm820_vm2, %vm821_vm3 }
 0x1ba   :  { %v675_v26 = vmul.f32 %v2822_v56, %v2752_v3  ;;  %v983_v58 = vmul.f32 %v2487_v46, %v947_v42  ;;  %vm670_vm5 = vweird.f32 %v2746_v61  ;;  %vm680_vm6 = vweird.f32 %v2752_v3 }
 0x1bb   :  { %1740 = vrsqrt.f32 %v2813_v12  ;;  %v505_v14 = vpop.xlane.xlu0 %504  ;;  %v823_v57 = vsel %vm2836_vm4, %v2748_v40, %v819_v28  ;;  %vm830_vm7 = vweird.f32 %v2728_v4  ;;  %v666_v42 = vmul.f32 %v2815_v35, %v665_v62  ;;  %v508_v3 = vpop.xlane.xlu1 %507 }
 0x1bc   :  { %v676_v8 = vmul.f32 %v2822_v56, %v675_v26  ;;  %1742 = vrsqrt.f32 %v2820_v59  ;;  %v828_v47 = vsub.f32 1.5, %v827_v13  ;;  %vm831_vm8 = vweird.f32 %v2785_v45 }
 0x1bd   :  { %v897_v18 = vmul.f32 0.5, %v896_v7  ;;  %v581_v60 = vmul.f32 %v529_v15, %v2224_v11  ;;  %v2855_v53 = vadd.f32 %v2500_v38, %v991_v63  ;;  %v667_v40 = vmul.f32 0.5, %v666_v42  ;;  %vm2908_vm3 = vmor %vm830_vm7, %vm831_vm8 }
 0x1be   :  { %v2852_v10 = vpop.eup %1738  ;;  %v677_v28 = vmul.f32 0.5, %v676_v8  ;;  %v573_v25 = vmul.f32 %v505_v14, %v2224_v11  ;;  %v963_v62 = vmul.f32 %v823_v57, %v2332_v51  ;;  %vm671_vm9 = vweird.f32 %v2815_v35 }
 0x1bf   :  { %v745_v13 = vmul.f32 %v2852_v10, %v2808_v30  ;;  %vm750_vm10 = vweird.f32 %v2808_v30  ;;  %v2864_v7 = vadd.f32 %v2500_v38, %v983_v58  ;;  %vm901_vm11 = vweird.f32 %v2801_v34  ;;  %vm2882_vm13 = vmor %vm670_vm5, %vm671_vm9 }
 0x1c0   :  { %v668_v63 = vsub.f32 1.5, %v667_v40  ;;  %v678_v26 = vsub.f32 1.5, %v677_v28  ;;  %vm681_vm0 = vweird.f32 %v2822_v56  ;;  %v829_v51 = vmul.f32 %v2785_v45, %v828_v47 }
 0x1c1   :  { %v2868_v15 = vpop.eup %1740  ;;  %v898_v14 = vsub.f32 1.5, %v897_v18  ;;  %v746_v57 = vmul.f32 %v2852_v10, %v745_v13  ;;  %v2872_v42 = vadd.f32 1e-05, %v581_v60  ;;  %vm900_vm12 = vweird.f32 %v2739_v52  ;;  %vm682_vm15 = vmor %vm680_vm6, %vm681_vm0 }
 0x1c2   :  { %v2874_v8 = vpop.eup %1742  ;;  %v669_v58 = vmul.f32 %v2815_v35, %v668_v63  ;;  %v679_v18 = vmul.f32 %v2822_v56, %v678_v26  ;;  %v905_v60 = vmul.f32 %v2868_v15, %v2813_v12  ;;  %v2889_v47 = vadd.f32 1e-05, %v573_v25  ;;  %vm2951_vm7 = vmor %vm900_vm12, %vm901_vm11 }
 0x1c3   :  { %v999_v28 = vmul.f32 %v2487_v46, %v963_v62  ;;  %v747_v13 = vmul.f32 0.5, %v746_v57  ;;  %vm751_vm1 = vweird.f32 %v2852_v10  ;;  %vm910_vm2 = vweird.f32 %v2813_v12  ;;  %v484_v62 = vpop.xlane.xlu2 %483 }
 0x1c4   :  { %v915_v61 = vmul.f32 %v2874_v8, %v2820_v59  ;;  %v673_v63 = vsel %vm2882_vm13, %v2815_v35, %v669_v58  ;;  %v683_v25 = vsel %vm682_vm15, %v2822_v56, %v679_v18  ;;  %v906_v26 = vmul.f32 %v2868_v15, %v905_v60  ;;  %vm752_vm5 = vmor %vm750_vm10, %vm751_vm1 }
 0x1c5   :  { %1744 = vrsqrt.f32 %v2872_v42  ;;  %v948_v16 = vmul.f32 %v673_v63, %v2345_v43  ;;  %v949_v35 = vmul.f32 %v683_v25, %v2356_v5  ;;  %v748_v58 = vsub.f32 1.5, %v747_v13  ;;  %v532_v25 = vpop.xlane.xlu0 %531 }
 0x1c6   :  { %v916_v56 = vmul.f32 %v2874_v8, %v915_v61  ;;  %vm920_vm4 = vweird.f32 %v2820_v59  ;;  %v833_v40 = vsel %vm2908_vm3, %v2785_v45, %v829_v51  ;;  %v2920_v18 = vmul.f32 %v2801_v34, %v898_v14 }
 0x1c7   :  { %v907_v4 = vmul.f32 0.5, %v906_v26  ;;  %1746 = vrsqrt.f32 %v2889_v47  ;;  %v2924_v60 = vadd.f32 %v2500_v38, %v999_v28  ;;  %v984_v43 = vmul.f32 %v2487_v46, %v948_v16 }
 0x1c8   :  { %v749_v5 = vmul.f32 %v2852_v10, %v748_v58  ;;  %v917_v13 = vmul.f32 0.5, %v916_v56  ;;  %v985_v61 = vmul.f32 %v2487_v46, %v949_v35  ;;  %v574_v51 = vmul.f32 %v508_v3, %v2224_v11 }
 0x1c9   :  { %v908_v45 = vsub.f32 1.5, %v907_v4  ;;  %v566_v14 = vmul.f32 %v484_v62, %v2224_v11  ;;  %v964_v28 = vmul.f32 %v833_v40, %v2335_v9  ;;  %vm911_vm6 = vweird.f32 %v2868_v15 }
 0x1ca   :  { %v753_v63 = vsel %vm752_vm5, %v2852_v10, %v749_v5  ;;  %v918_v16 = vsub.f32 1.5, %v917_v13  ;;  %v2941_v57 = vadd.f32 %v2500_v38, %v984_v43  ;;  %v2945_v3 = vadd.f32 1e-05, %v574_v51  ;;  %vm2970_vm10 = vmor %vm910_vm2, %vm911_vm6 }
 0x1cb   :  { %v2938_v26 = vpop.eup %1744  ;;  %v956_v30 = vmul.f32 %v753_v63, %v2350_v24  ;;  %v909_v35 = vmul.f32 %v2868_v15, %v908_v45  ;;  %vm921_vm8 = vweird.f32 %v2874_v8  ;;  %v2959_v24 = vadd.f32 1e-05, %v566_v14  ;;  %v556_v14 = vpop.xlane.xlu2 %555 }
 0x1cc   :  { %v919_v10 = vmul.f32 %v2874_v8, %v918_v16  ;;  %v835_v62 = vmul.f32 %v2938_v26, %v2872_v42  ;;  %vm1313_vm9 = vcmp.eq.s32.totalorder %v2128_v29, 1  ;;  %v2963_v56 = vadd.f32 %v2500_v38, %v985_v61  ;;  %vm2994_vm0 = vmor %vm920_vm4, %vm921_vm8 }
 0x1cd   :  { %v1747_v58 = vpop.eup %1746  ;;  %v992_v52 = vmul.f32 %v2487_v46, %v956_v30  ;;  %1748 = vrsqrt.f32 %v2945_v3  ;;  %v582_v4 = vmul.f32 %v532_v25, %v2224_v11  ;;  %vm1314_vm11 = vcmp.eq.s32.totalorder %v2132_v31, 1 }
 0x1ce   :  { %v903_v43 = vsel %vm2951_vm7, %v2801_v34, %v2920_v18  ;;  %v913_v5 = vsel %vm2970_vm10, %v2868_v15, %v909_v35  ;;  %v836_v12 = vmul.f32 %v2938_v26, %v835_v62  ;;  %v755_v13 = vmul.f32 %v1747_v58, %v2889_v47  ;;  %v535_v15 = vpop.xlane.xlu1 %534 }
 0x1cf   :  { %v2987_v61 = vmul.f32 %v2487_v46, %v964_v28  ;;  %v1052_v45 = vmax.f32 %v2941_v57, 0.0  ;;  %vm840_vm12 = vweird.f32 %v2872_v42  ;;  %vm760_vm13 = vweird.f32 %v2889_v47 }
 0x1d0   :  { %v923_v28 = vsel %vm2994_vm0, %v2874_v8, %v919_v10  ;;  %v837_v63 = vmul.f32 0.5, %v836_v12  ;;  %v756_v16 = vmul.f32 %v1747_v58, %v755_v13  ;;  %1750 = vrsqrt.f32 %v2959_v24 }
 0x1d1   :  { %vm1315_vm15 = vcmp.eq.s32.totalorder %v2164_v55, 1  ;;  %v1053_v59 = vmax.f32 %v2963_v56, 0.0  ;;  %v3007_v25 = vadd.f32 %v2500_v38, %v992_v52  ;;  %v972_v30 = vmul.f32 %v913_v5, %v2366_v49 }
 0x1d2   :  { %v3010_v35 = vadd.f32 1e-05, %v582_v4  ;;  %v838_v62 = vsub.f32 1.5, %v837_v63  ;;  %v757_v40 = vmul.f32 0.5, %v756_v16  ;;  %v583_v51 = vmul.f32 %v535_v15, %v2224_v11 }
 0x1d3   :  { %v590_v8 = vmul.f32 %v556_v14, %v2224_v11  ;;  %v1749_v10 = vpop.eup %1748  ;;  %v973_v12 = vmul.f32 %v923_v28, %v2377_v17  ;;  %vm841_vm1 = vweird.f32 %v2938_v26  ;;  %vm761_vm2 = vweird.f32 %v1747_v58 }
 0x1d4   :  { %1752 = vrsqrt.f32 %v3010_v35  ;;  %v839_v52 = vmul.f32 %v2938_v26, %v838_v62  ;;  %v758_v13 = vsub.f32 1.5, %v757_v40  ;;  %v765_v49 = vmul.f32 %v1749_v10, %v2945_v3  ;;  %vm3032_vm4 = vmor %vm840_vm12, %vm841_vm1 }
 0x1d5   :  { %vm770_vm3 = vweird.f32 %v2945_v3  ;;  %v1060_v4 = vmax.f32 %v3007_v25, 0.0  ;;  %v3022_v5 = vmul.f32 %v2487_v46, %v972_v30  ;;  %v3024_v15 = vadd.f32 1e-05, %v583_v51  ;;  %vm762_vm5 = vmor %vm760_vm13, %vm761_vm2 }
 0x1d6   :  { %v3026_v17 = vadd.f32 1e-05, %v590_v8  ;;  %v3028_v14 = vpop.eup %1750  ;;  %v759_v63 = vmul.f32 %v1747_v58, %v758_v13  ;;  %v766_v16 = vmul.f32 %v1749_v10, %v765_v49  ;;  %v1059_v62 = vmax.f32 %v2855_v53, 0.0 }
 0x1d7   :  { %v3775_v40 = vmax.f32 %v2742_v2, 0.0  ;;  %v3044_v51 = vmul.f32 %v2487_v46, %v973_v12  ;;  %v685_v42 = vmul.f32 %v3028_v14, %v2959_v24  ;;  %1754 = vrsqrt.f32 %v3024_v15 }
 0x1d8   :  { %v3776_v53 = vmax.f32 %v2804_v50, 0.0  ;;  %v843_v29 = vsel %vm3032_vm4, %v2938_v26, %v839_v52  ;;  %v763_v8 = vsel %vm762_vm5, %v1747_v58, %v759_v63  ;;  %v767_v12 = vmul.f32 0.5, %v766_v16  ;;  %v487_v52 = vpop.xlane.xlu0 %486 }
 0x1d9   :  { %v3041_v30 = vsel %vm1313_vm9, -inf, %v3775_v40  ;;  %1756 = vrsqrt.f32 %v3026_v17  ;;  %v957_v13 = vmul.f32 %v763_v8, %v2387_v37  ;;  %v686_v49 = vmul.f32 %v3028_v14, %v685_v42 }
 0x1da   :  { %v3056_v2 = vsel %vm1314_vm11, -inf, %v3776_v53  ;;  %v3062_v47 = vpop.eup %1752  ;;  %vm690_vm6 = vweird.f32 %v2959_v24  ;;  %v1395_v31 = vsel %vm264_vm14, %v3041_v30, -inf  ;;  %v768_v50 = vsub.f32 1.5, %v767_v12 }
 0x1db   :  { %vm771_vm8 = vweird.f32 %v1749_v10  ;;  %v845_v26 = vmul.f32 %v3062_v47, %v3010_v35  ;;  %v3073_v58 = vsel %vm1315_vm15, -inf, %v1059_v62  ;;  %vm1304_vm9 = vcmp.eq.s32.totalorder %v2084_v6, 1 }
 0x1dc   :  { %v965_v37 = vmul.f32 %v843_v29, %v2371_v33  ;;  %v687_v28 = vmul.f32 0.5, %v686_v49  ;;  %vm850_vm10 = vweird.f32 %v3010_v35  ;;  %v1397_v63 = vsel %vm264_vm14, %v3056_v2, -inf  ;;  %vm772_vm12 = vmor %vm770_vm3, %vm771_vm8 }
 0x1dd   :  { %vm1305_vm11 = vcmp.eq.s32.totalorder %v2054_v54, 1  ;;  %v993_v16 = vmul.f32 %v2487_v46, %v957_v13  ;;  %v769_v40 = vmul.f32 %v1749_v10, %v768_v50  ;;  %v846_v55 = vmul.f32 %v3062_v47, %v845_v26  ;;  %v3084_v42 = vpop.eup %1754 }
 0x1de   :  { %v1396_v62 = vmax.f32 %v2660_v23, %v1395_v31  ;;  %vm1306_vm0 = vcmp.eq.s32.totalorder %v2108_v19, 1  ;;  %v688_v33 = vsub.f32 1.5, %v687_v28  ;;  %vm691_vm13 = vweird.f32 %v3028_v14 }
 0x1df   :  { %v1399_v53 = vsel %vm264_vm14, %v3073_v58, -inf  ;;  %v567_v29 = vmul.f32 %v487_v52, %v2224_v11  ;;  %v1757_v8 = vpop.eup %1756  ;;  %vm1307_vm15 = vcmp.eq.s32.totalorder %v2074_v0, 1  ;;  %v773_v23 = vsel %vm772_vm12, %v1749_v10, %v769_v40  ;;  %vm692_vm2 = vmor %vm690_vm6, %vm691_vm13 }
 0x1e0   :  { %v847_v12 = vmul.f32 0.5, %v846_v55  ;;  %v855_v13 = vmul.f32 %v3084_v42, %v3024_v15  ;;  %v1398_v49 = vmax.f32 %v1396_v62, %v1397_v63  ;;  %v958_v3 = vmul.f32 %v773_v23, %v2398_v32 }
 0x1e1   :  { %v689_v31 = vmul.f32 %v3028_v14, %v688_v33  ;;  %vm851_vm1 = vweird.f32 %v3062_v47  ;;  %v925_v50 = vmul.f32 %v1757_v8, %v3026_v17  ;;  %v3102_v26 = vadd.f32 %v2500_v38, %v993_v16 }
 0x1e2   :  { %v848_v10 = vsub.f32 1.5, %v847_v12  ;;  %v856_v52 = vmul.f32 %v3084_v42, %v855_v13  ;;  %v1400_v28 = vmax.f32 %v1398_v49, %v1399_v53  ;;  %v994_v63 = vmul.f32 %v2487_v46, %v958_v3  ;;  %vm3129_vm8 = vmor %vm850_vm10, %vm851_vm1 }
 0x1e3   :  { %v693_v32 = vsel %vm692_vm2, %v3028_v14, %v689_v31  ;;  %v926_v40 = vmul.f32 %v1757_v8, %v925_v50  ;;  %v3109_v55 = vadd.f32 1e-05, %v567_v29  ;;  %vm1320_vm3 = vcmp.eq.s32.totalorder %v2172_v1, 1  ;;  %v3777_v14 = vld [vmem:[#allocation10_spill] sm:$0xff]  ;;  %v3778_v29 = vld [vmem:[#allocation11_spill] sm:$0xff] }
 0x1e4   :  { %v849_v62 = vmul.f32 %v3062_v47, %v848_v10  ;;  %v857_v16 = vmul.f32 0.5, %v856_v52  ;;  %v1401_v33 = vrot.slane %v1400_v28, 4  ;;  %v1051_v24 = vmax.f32 %v2864_v7, 0.0 }
 0x1e5   :  { %vm1321_vm4 = vcmp.eq.s32.totalorder %v2202_v48, 1  ;;  %v3116_v23 = vadd.f32 %v2500_v38, %v994_v63  ;;  %v950_v53 = vmul.f32 %v693_v32, %v2392_v44  ;;  %v927_v12 = vmul.f32 0.5, %v926_v40  ;;  %v3784_v32 = vld [vmem:[#allocation22_spill] sm:$0xff] }
 0x1e6   :  { %1758 = vrsqrt.f32 %v3109_v55  ;;  %vm1322_vm5 = vcmp.eq.s32.totalorder %v3777_v14, 1  ;;  %vm1323_vm6 = vcmp.eq.s32.totalorder %v3778_v29, 1  ;;  %v3123_v13 = vmul.f32 %v2487_v46, %v965_v37  ;;  %v3791_v14 = vld [vmem:[#allocation16_spill] sm:$0xff] }
 0x1e7   :  { %vm931_vm12 = vweird.f32 %v1757_v8  ;;  %v1402_v44 = vmax.f32 %v1400_v28, %v1401_v33  ;;  %v3781_v49 = vmax.f32 %v2532_v21, 0.0  ;;  %v853_v37 = vsel %vm3129_vm8, %v3062_v47, %v849_v62  ;;  %v511_v62 = vpop.xlane.xlu2 %510 }
 0x1e8   :  { %v858_v31 = vsub.f32 1.5, %v857_v16  ;;  %v928_v50 = vsub.f32 1.5, %v927_v12  ;;  %v3782_v35 = vmax.f32 %v2655_v41, 0.0  ;;  %vm930_vm10 = vweird.f32 %v3026_v17  ;;  %v3785_v12 = vld [vmem:[#allocation23_spill] sm:$0xff] }
 0x1e9   :  { %v3137_v3 = vsel %vm1304_vm9, -inf, %v3781_v49  ;;  %v1403_v21 = vrot.slane %v1402_v44, 2  ;;  %v3783_v6 = vmax.f32 %v2672_v36, 0.0  ;;  %v986_v63 = vmul.f32 %v2487_v46, %v950_v53  ;;  %vm932_vm9 = vmor %vm930_vm10, %vm931_vm12 }
 0x1ea   :  { %v3146_v10 = vsel %vm1305_vm11, -inf, %v3782_v35  ;;  %v929_v41 = vmul.f32 %v1757_v8, %v928_v50  ;;  %v3160_v54 = vsel %vm1307_vm15, -inf, %v1051_v24  ;;  %v966_v40 = vmul.f32 %v853_v37, %v3784_v32 }
 0x1eb   :  { %v3154_v28 = vsel %vm1306_vm0, -inf, %v3783_v6  ;;  %v1404_v17 = vmax.f32 %v1402_v44, %v1403_v21  ;;  %v1368_v36 = vsel %vm264_vm14, %v3137_v3, -inf  ;;  %v1369_v19 = vsel %vm264_vm14, %v3146_v10, -inf }
 0x1ec   :  { %v3168_v16 = vpop.eup %1758  ;;  %v3171_v33 = vmul.f32 %v3084_v42, %v858_v31  ;;  %vm861_vm11 = vweird.f32 %v3084_v42  ;;  %v933_v0 = vsel %vm932_vm9, %v1757_v8, %v929_v41  ;;  %v1370_v24 = vmax.f32 %v1368_v36, %v1369_v19  ;;  %v3786_v31 = vld [vmem:[#allocation19_spill] sm:$0xff] }
 0x1ed   :  { %v1371_v53 = vsel %vm264_vm14, %v3154_v28, -inf  ;;  %v974_v7 = vmul.f32 %v933_v0, %v3785_v12  ;;  %v1405_v44 = vrot.slane %v1404_v17, 1  ;;  %v695_v49 = vmul.f32 %v3168_v16, %v3109_v55 }
 0x1ee   :  { %vm700_vm0 = vweird.f32 %v3109_v55  ;;  %v1373_v37 = vsel %vm264_vm14, %v3160_v54, -inf  ;;  %vm1334_vm13 = vcmp.eq.s32.totalorder %v3786_v31, 1  ;;  %vm860_vm15 = vweird.f32 %v3024_v15 }
 0x1ef   :  { %v1372_v8 = vmax.f32 %v1370_v24, %v1371_v53  ;;  %v575_v50 = vmul.f32 %v511_v62, %v2224_v11  ;;  %v1067_v35 = vmax.f32 %v2924_v60, 0.0  ;;  %v3787_v21 = vmax.f32 %v2596_v22, 0.0  ;;  %v3789_v62 = vld [vmem:[#allocation15_spill] sm:$0xff]  ;;  %v1303_v34 = vpop.permute.xlu2 %1302 }
 0x1f0   :  { %v1010_v41 = vmul.f32 %v2487_v46, %v974_v7  ;;  %v1406_v32 = vmax.f32 %v1404_v17, %v1405_v44  ;;  %v696_v36 = vmul.f32 %v3168_v16, %v695_v49  ;;  %v3788_v19 = vmax.f32 %v2609_v39, 0.0  ;;  %v559_v39 = vpop.xlane.xlu0 %558 }
 0x1f1   :  { %v3190_v6 = vsel %vm1320_vm3, -inf, %v3787_v21  ;;  %vm1332_vm1 = vcmp.eq.s32.totalorder %v3789_v62, 1  ;;  %v1374_v60 = vmax.f32 %v1372_v8, %v1373_v37  ;;  %v3201_v24 = vadd.f32 1e-05, %v575_v50  ;;  %v3293_v62 = vld [vmem:[%s3680_s3] ss:$0 sm:$0xff] }
 0x1f2   :  { %v3198_v0 = vsel %vm1321_vm4, -inf, %v3788_v19  ;;  %v3790_v1 = vmax.f32 %v2797_v20, 0.0  ;;  %v3211_v46 = vsel %vm1323_vm6, -inf, %v1067_v35  ;;  %1484 = vrot.lane.b32.xlu2 %v1406_v32, %s1768_s16  ;;  %v697_v48 = vmul.f32 0.5, %v696_v36 }
 0x1f3   :  { %v1420_v17 = vsel %vm264_vm14, %v3190_v6, -inf  ;;  %v1421_v53 = vsel %vm264_vm14, %v3198_v0, -inf  ;;  %vm1333_vm2 = vcmp.eq.s32.totalorder %v3791_v14, 1  ;;  %vm701_vm3 = vweird.f32 %v3168_v16 }
 0x1f4   :  { %v3207_v22 = vsel %vm1322_vm5, -inf, %v3790_v1  ;;  %v1375_v29 = vrot.slane %v1374_v60, 4  ;;  %1760 = vrsqrt.f32 %v3201_v24  ;;  %v1422_v12 = vmax.f32 %v1420_v17, %v1421_v53  ;;  %vm702_vm4 = vmor %vm700_vm0, %vm701_vm3  ;;  %v3795_v17 = vld [vmem:[#allocation14_spill] sm:$0xff]  ;;  %v3796_v53 = vld [vmem:[#allocation25_spill] sm:$0xff] }
 0x1f5   :  { %v1423_v20 = vsel %vm264_vm14, %v3207_v22, -inf  ;;  %v698_v7 = vsub.f32 1.5, %v697_v48  ;;  %v1425_v44 = vsel %vm264_vm14, %v3211_v46, -inf  ;;  %v591_v49 = vmul.f32 %v559_v39, %v2224_v11  ;;  %v3240_v11 = vld [vmem:[%s3679_s2] ss:$0 sm:$0xff]  ;;  %vm3251_vm5 = vmor %vm860_vm15, %vm861_vm11  ;;  %v3794_v48 = vld [vmem:[#allocation12_spill] sm:$0xff] }
 0x1f6   :  { %v1046_v37 = vadd.f32 %v2500_v38, %v1010_v41  ;;  %v1376_v8 = vmax.f32 %v1374_v60, %v1375_v29  ;;  %v1424_v50 = vmax.f32 %v1422_v12, %v1423_v20  ;;  %v1044_v35 = vadd.f32 %v2500_v38, %v3022_v5  ;;  %v3797_v12 = vld [vmem:[#allocation20_spill] sm:$0xff] }
 0x1f7   :  { %v1045_v21 = vadd.f32 %v2500_v38, %v3044_v51  ;;  %v3232_v32 = vadd.f32 %v2500_v38, %v986_v63  ;;  %v699_v36 = vmul.f32 %v3168_v16, %v698_v7  ;;  %v3235_v19 = vadd.f32 1e-05, %v591_v49 }
 0x1f8   :  { %v1078_v1 = vmax.f32 %v1046_v37, 0.0  ;;  %v1002_v41 = vmul.f32 %v3240_v11, %v966_v40  ;;  %v1377_v5 = vrot.slane %v1376_v8, 2  ;;  %v1426_v38 = vmax.f32 %v1424_v50, %v1425_v44 }
 0x1f9   :  { %v1076_v51 = vmax.f32 %v1044_v35, 0.0  ;;  %v703_v60 = vsel %vm702_vm4, %v3168_v16, %v699_v36  ;;  %1762 = vrsqrt.f32 %v3235_v19  ;;  %v1077_v55 = vmax.f32 %v1045_v21, 0.0  ;;  %v3798_v35 = vld [vmem:[#allocation24_spill] sm:$0xff] }
 0x1fa   :  { %v3259_v40 = vsel %vm1334_vm13, -inf, %v1078_v1  ;;  %v3261_v39 = vpop.eup %1760  ;;  %vm1325_vm6 = vcmp.eq.s32.totalorder %v3794_v48, 1  ;;  %vm1324_vm8 = vcmp.eq.s32.totalorder %v3795_v17, 1  ;;  %v863_v15 = vsel %vm3251_vm5, %v3084_v42, %v3171_v33  ;;  %v3803_v48 = vld [vmem:[#allocation3_spill] sm:$0xff] }
 0x1fb   :  { %v951_v16 = vmul.f32 %v703_v60, %v3796_v53  ;;  %v1378_v20 = vmax.f32 %v1376_v8, %v1377_v5  ;;  %v1427_v29 = vrot.slane %v1426_v38, 4  ;;  %vm1326_vm12 = vcmp.eq.s32.totalorder %v3797_v12, 1 }
 0x1fc   :  { %v1054_v31 = vmax.f32 %v3232_v32, 0.0  ;;  %v775_v7 = vmul.f32 %v3261_v39, %v3201_v24  ;;  %vm780_vm10 = vweird.f32 %v3201_v24  ;;  %v3277_v44 = vsel %vm1332_vm1, -inf, %v1076_v51 }
 0x1fd   :  { %v987_v49 = vmul.f32 %v3240_v11, %v951_v16  ;;  %v1379_v42 = vrot.slane %v1378_v20, 1  ;;  %v1428_v33 = vmax.f32 %v1426_v38, %v1427_v29  ;;  %v3282_v37 = vsel %vm264_vm14, %v3259_v40, -inf }
 0x1fe   :  { %v776_v8 = vmul.f32 %v3261_v39, %v775_v7  ;;  %v3287_v50 = vsel %vm1333_vm2, -inf, %v1077_v55  ;;  %v967_v21 = vmul.f32 %v863_v15, %v3798_v35  ;;  %v1036_v36 = vadd.f32 %v3293_v62, %v2987_v61  ;;  %v1279_v15 = vpop.permute.xlu1 %1278 }
 0x1ff   :  { %v1380_v1 = vmax.f32 %v1378_v20, %v1379_v42  ;;  %vm781_vm9 = vweird.f32 %v3261_v39  ;;  %v1429_v5 = vrot.slane %v1428_v33, 2  ;;  %v3300_v38 = vsel %vm264_vm14, %v3277_v44, -inf  ;;  %v3302_v14 = vpop.eup %1762  ;;  %v3799_v42 = vld [vmem:[#allocation13_spill] sm:$0xff] }
 0x200   :  { %v777_v51 = vmul.f32 0.5, %v776_v8  ;;  %v1003_v63 = vmul.f32 %v3240_v11, %v967_v21  ;;  %v1037_v60 = vadd.f32 %v3293_v62, %v3123_v13  ;;  %v1038_v55 = vadd.f32 %v3293_v62, %v1002_v41  ;;  %vm782_vm2 = vmor %vm780_vm10, %vm781_vm9 }
 0x201   :  { %v3309_v61 = vadd.f32 %v3293_v62, %v987_v49  ;;  %1480 = vrot.lane.b32.xlu1 %v1380_v1, %s1768_s16  ;;  %v1430_v53 = vmax.f32 %v1428_v33, %v1429_v5  ;;  %v935_v16 = vmul.f32 %v3302_v14, %v3235_v19  ;;  %vm940_vm11 = vweird.f32 %v3235_v19  ;;  %v3800_v49 = vld [vmem:[#allocation17_spill] sm:$0xff] }
 0x202   :  { %v3317_v20 = vsel %vm264_vm14, %v3287_v50, -inf  ;;  %v778_v29 = vsub.f32 1.5, %v777_v51  ;;  %v1039_v13 = vadd.f32 %v3293_v62, %v1003_v63  ;;  %v1068_v41 = vmax.f32 %v1036_v36, 0.0  ;;  %v3801_v51 = vld [vmem:[#allocation18_spill] sm:$0xff] }
 0x203   :  { %v1069_v7 = vmax.f32 %v1037_v60, 0.0  ;;  %vm1328_vm0 = vcmp.eq.s32.totalorder %v3799_v42, 1  ;;  %vm1329_vm13 = vcmp.eq.s32.totalorder %v3800_v49, 1  ;;  %v1431_v8 = vrot.slane %v1430_v53, 1 }
 0x204   :  { %v936_v33 = vmul.f32 %v3302_v14, %v935_v16  ;;  %v1070_v35 = vmax.f32 %v1038_v55, 0.0  ;;  %vm1327_vm15 = vcmp.eq.s32.totalorder %v1279_v15, 1  ;;  %v779_v21 = vmul.f32 %v3261_v39, %v778_v29  ;;  %v3802_v16 = vld [vmem:[#allocation2_spill] sm:$0xff]  ;;  %v3804_v29 = vld [vmem:[#allocation5_spill] sm:$0xff] }
 0x205   :  { %v1071_v1 = vmax.f32 %v1039_v13, 0.0  ;;  %v3326_v5 = vsel %vm1324_vm8, -inf, %v1068_v41  ;;  %v3330_v36 = vsel %vm1325_vm6, -inf, %v1069_v7  ;;  %vm1330_vm1 = vcmp.eq.s32.totalorder %v3801_v51, 1  ;;  %v3805_v41 = vld [vmem:[#allocation4_spill] sm:$0xff]  ;;  %v3806_v7 = vld [vmem:[#allocation26_spill] sm:$0xff] }
 0x206   :  { %v1432_v63 = vmax.f32 %v1430_v53, %v1431_v8  ;;  %v937_v60 = vmul.f32 0.5, %v936_v33  ;;  %v3339_v55 = vsel %vm1326_vm12, -inf, %v1070_v35  ;;  %v1433_v17 = vsel %vm264_vm14, %v3326_v5, -inf  ;;  %v3808_v15 = vld [vmem:[#allocation29_spill] sm:$0xff] }
 0x207   :  { %vm1309_vm3 = vcmp.eq.s32.totalorder %v3802_v16, 1  ;;  %vm1308_vm4 = vcmp.eq.s32.totalorder %v3803_v48, 1  ;;  %vm1310_vm5 = vcmp.eq.s32.totalorder %v3804_v29, 1  ;;  %v783_v13 = vsel %vm782_vm2, %v3261_v39, %v779_v21  ;;  %v3807_v39 = vld [vmem:[#allocation21_spill] sm:$0xff] }
 0x208   :  { %v1434_v24 = vsel %vm264_vm14, %v3330_v36, -inf  ;;  %v1436_v53 = vsel %vm264_vm14, %v3339_v55, -inf  ;;  %v3352_v12 = vsel %vm1327_vm15, -inf, %v1071_v1  ;;  %vm1311_vm6 = vcmp.eq.s32.totalorder %v3805_v41, 1  ;;  %1488 = vrot.lane.b32.xlu0 %v1432_v63, %s1768_s16 }
 0x209   :  { %v959_v8 = vmul.f32 %v783_v13, %v3806_v7  ;;  %v938_v33 = vsub.f32 1.5, %v937_v60  ;;  %vm941_vm8 = vweird.f32 %v3302_v14  ;;  %v1435_v35 = vmax.f32 %v1433_v17, %v1434_v24  ;;  %v3809_v13 = vld [vmem:[#allocation30_spill] sm:$0xff] }
 0x20a   :  { %v971_v21 = vmul.f32 %v903_v43, %v3807_v39  ;;  %v1040_v1 = vadd.f32 %v3293_v62, %v3808_v15  ;;  %v1041_v47 = vadd.f32 %v3293_v62, %v2760_v27  ;;  %v1042_v63 = vadd.f32 %v3293_v62, %v3809_v13  ;;  %vm942_vm7 = vmor %vm940_vm11, %vm941_vm8  ;;  %v1291_v27 = vpop.permute.xlu0 %1290  ;;  %v3810_v15 = vld [vmem:[#allocation6_spill] sm:$0xff]  ;;  %v3811_v13 = vld [vmem:[#allocation7_spill] sm:$0xff] }
 0x20b   :  { %v995_v60 = vmul.f32 %v3240_v11, %v959_v8  ;;  %v939_v17 = vmul.f32 %v3302_v14, %v938_v33  ;;  %v1437_v24 = vmax.f32 %v1435_v35, %v1436_v53  ;;  %v1438_v9 = vsel %vm264_vm14, %v3352_v12, -inf  ;;  %v3812_v35 = vld [vmem:[#allocation27_spill] sm:$0xff] }
 0x20c   :  { %v1007_v18 = vmul.f32 %v3240_v11, %v971_v21  ;;  %v1072_v43 = vmax.f32 %v1040_v1, 0.0  ;;  %v1073_v7 = vmax.f32 %v1041_v47, 0.0  ;;  %v1074_v39 = vmax.f32 %v1042_v63, 0.0  ;;  %v3813_v63 = vld [vmem:[#allocation8_spill] sm:$0xff] }
 0x20d   :  { %vm1316_vm12 = vcmp.eq.s32.totalorder %v3810_v15, 1  ;;  %vm1317_vm10 = vcmp.eq.s32.totalorder %v3811_v13, 1  ;;  %v943_v8 = vsel %vm942_vm7, %v3302_v14, %v939_v17  ;;  %v1461_v53 = vmax.f32 %v3300_v38, %v3317_v20  ;;  %v3814_v14 = vld [vmem:[#allocation9_spill] sm:$0xff] }
 0x20e   :  { %v1439_v33 = vmax.f32 %v1437_v24, %v1438_v9  ;;  %v1055_v19 = vmax.f32 %v3309_v61, 0.0  ;;  %v975_v52 = vmul.f32 %v943_v8, %v3812_v35  ;;  %v1043_v21 = vadd.f32 %v3293_v62, %v1007_v18 }
 0x20f   :  { %v3387_v47 = vsel %vm1328_vm0, -inf, %v1072_v43  ;;  %v3391_v1 = vsel %vm1329_vm13, -inf, %v1073_v7  ;;  %vm1319_vm9 = vcmp.eq.s32.totalorder %v3813_v63, 1  ;;  %vm1318_vm11 = vcmp.eq.s32.totalorder %v3814_v14, 1 }
 0x210   :  { %vm1335_vm15 = vcmp.eq.s32.totalorder %v1303_v34, 1  ;;  %v1463_v38 = vmax.f32 %v1461_v53, %v3282_v37  ;;  %v1440_v61 = vrot.slane %v1439_v33, 4  ;;  %vm1331_vm2 = vcmp.eq.s32.totalorder %v1291_v27, 1 }
 0x211   :  { %v1031_v20 = vadd.f32 %v3293_v62, %v995_v60  ;;  %v1011_v17 = vmul.f32 %v3240_v11, %v975_v52  ;;  %v1446_v42 = vsel %vm264_vm14, %v3387_v47, -inf  ;;  %v3402_v49 = vsel %vm1330_vm1, -inf, %v1074_v39 }
 0x212   :  { %v1441_v24 = vmax.f32 %v1439_v33, %v1440_v61  ;;  %v3408_v9 = vsel %vm1308_vm4, -inf, %v1052_v45  ;;  %v3414_v37 = vsel %vm1309_vm3, -inf, %v1053_v59  ;;  %v3420_v52 = vsel %vm1310_vm5, -inf, %v1054_v31 }
 0x213   :  { %v1047_v11 = vadd.f32 %v3293_v62, %v1011_v17  ;;  %v1075_v51 = vmax.f32 %v1043_v21, 0.0  ;;  %v1447_v57 = vsel %vm264_vm14, %v3391_v1, -inf  ;;  %v3427_v45 = vsel %vm1311_vm6, -inf, %v1055_v19 }
 0x214   :  { %v1442_v56 = vrot.slane %v1441_v24, 2  ;;  %v1449_v59 = vsel %vm264_vm14, %v3402_v49, -inf  ;;  %v1381_v32 = vsel %vm264_vm14, %v3408_v9, -inf  ;;  %v1382_v31 = vsel %vm264_vm14, %v3414_v37, -inf }
 0x215   :  { %v1079_v16 = vmax.f32 %v1047_v11, 0.0  ;;  %v3436_v62 = vsel %vm1331_vm2, -inf, %v1075_v51  ;;  %v1383_v48 = vmax.f32 %v1381_v32, %v1382_v31  ;;  %v1384_v29 = vsel %vm264_vm14, %v3420_v52, -inf }
 0x216   :  { %v1448_v41 = vmax.f32 %v1446_v42, %v1447_v57  ;;  %v1443_v60 = vmax.f32 %v1441_v24, %v1442_v56  ;;  %v1386_v18 = vsel %vm264_vm14, %v3427_v45, -inf  ;;  %v1063_v43 = vmax.f32 %v1031_v20, 0.0 }
 0x217   :  { %v3443_v7 = vsel %vm1335_vm15, -inf, %v1079_v16  ;;  %v1385_v39 = vmax.f32 %v1383_v48, %v1384_v29  ;;  %v3449_v27 = vsel %vm1316_vm12, -inf, %v1060_v4  ;;  %v3815_v8 = vmax.f32 %v3102_v26, 0.0 }
 0x218   :  { %v1464_v33 = vsel %vm264_vm14, %v3443_v7, -inf  ;;  %v1450_v19 = vmax.f32 %v1448_v41, %v1449_v59  ;;  %v1451_v34 = vsel %vm264_vm14, %v3436_v62, -inf  ;;  %v1444_v35 = vrot.slane %v1443_v60, 1 }
 0x219   :  { %v3455_v53 = vsel %vm1317_vm10, -inf, %v3815_v8  ;;  %v1465_v21 = vmax.f32 %v1463_v38, %v1464_v33  ;;  %v1387_v25 = vmax.f32 %v1385_v39, %v1386_v18  ;;  %v3816_v15 = vmax.f32 %v3116_v23, 0.0 }
 0x21a   :  { %v3469_v26 = vsel %vm1319_vm9, -inf, %v1063_v43  ;;  %v1445_v13 = vmax.f32 %v1443_v60, %v1444_v35  ;;  %v1407_v61 = vsel %vm264_vm14, %v3449_v27, -inf  ;;  %v1408_v20 = vsel %vm264_vm14, %v3455_v53, -inf }
 0x21b   :  { %v3465_v4 = vsel %vm1318_vm11, -inf, %v3816_v15  ;;  %v1466_v17 = vrot.slane %v1465_v21, 4  ;;  %v1452_v38 = vmax.f32 %v1450_v19, %v1451_v34  ;;  %v1388_v42 = vrot.slane %v1387_v25, 4 }
 0x21c   :  { %v1409_v24 = vmax.f32 %v1407_v61, %v1408_v20  ;;  %1490 = vrot.lane.b32.xlu2 %v1445_v13, %s1768_s16  ;;  %v1410_v23 = vsel %vm264_vm14, %v3465_v4, -inf  ;;  %v1412_v63 = vsel %vm264_vm14, %v3469_v26, -inf  ;;  %vm1536_vm0 = vcmask 523264   ;;  %v3817_v61 = vld [vmem:[#allocation28_spill] sm:$0xff] }
 0x21d   :  { %v1467_v14 = vmax.f32 %v1465_v21, %v1466_v17  ;;  %v1389_v11 = vmax.f32 %v1387_v25, %v1388_v42  ;;  %v1453_v56 = vrot.slane %v1452_v38, 4 }
 0x21e   :  { %v1411_v51 = vmax.f32 %v1409_v24, %v1410_v23 }
 0x21f   :  { %v1468_v57 = vrot.slane %v1467_v14, 2  ;;  %v1390_v59 = vrot.slane %v1389_v11, 2  ;;  %v1454_v48 = vmax.f32 %v1452_v38, %v1453_v56 }
 0x220   :  { %v1413_v32 = vmax.f32 %v1411_v51, %v1412_v63 }
 0x221   :  { %v1391_v31 = vmax.f32 %v1389_v11, %v1390_v59  ;;  %v1469_v60 = vmax.f32 %v1467_v14, %v1468_v57  ;;  %v1455_v39 = vrot.slane %v1454_v48, 2 }
 0x222   :  { %v1414_v16 = vrot.slane %v1413_v32, 4 }
 0x223   :  { %v1392_v29 = vrot.slane %v1391_v31, 1  ;;  %v1470_v33 = vrot.slane %v1469_v60, 1  ;;  %v1456_v21 = vmax.f32 %v1454_v48, %v1455_v39 }
 0x224   :  { %v1415_v41 = vmax.f32 %v1413_v32, %v1414_v16 }
 0x225   :  { %v1393_v18 = vmax.f32 %v1391_v31, %v1392_v29  ;;  %v1471_v35 = vmax.f32 %v1469_v60, %v1470_v33  ;;  %v1457_v25 = vrot.slane %v1456_v21, 1 }
 0x226   :  { %v1416_v43 = vrot.slane %v1415_v41, 2 }
 0x227   :  { %1482 = vrot.lane.b32.xlu0 %v1393_v18, %s1768_s16  ;;  %v1458_v15 = vmax.f32 %v1456_v21, %v1457_v25 }
 0x228   :  { %v1417_v8 = vmax.f32 %v1415_v41, %v1416_v43 }
 0x22a   :  { %v1418_v19 = vrot.slane %v1417_v8, 1 }
 0x22c   :  { %v1419_v34 = vmax.f32 %v1417_v8, %v1418_v19 }
 0x22e   :  { %1486 = vrot.lane.b32.xlu1 %v1419_v34, %s1768_s16 }
 0x22f   :  { %1494 = vrot.lane.b32.xlu0 %v1471_v35, %s1768_s16 }
 0x236   :  { %1492 = vrot.lane.b32.xlu1 %v1458_v15, %s1768_s16 }
 0x24c   :  { %v1485_v13 = vpop.permute.xlu2 %1484 }
 0x24d   :  { %v1512_v20 = vsel %vm264_vm14, %v3817_v61, %v1485_v13  ;;  %v1513_v17 = vsel %vm264_vm14, %v3041_v30, %v1485_v13  ;;  %v1514_v38 = vsel %vm264_vm14, %v3056_v2, %v1485_v13  ;;  %v1515_v42 = vsel %vm264_vm14, %v3073_v58, %v1485_v13 }
 0x24e   :  { %1545 = vst.msk [vmem:[%s3681_s5 + $0x40] sm:$0xff] %vm1536_vm0, %v1512_v20 }
 0x24f   :  { %1546 = vst.msk [vmem:[%s3681_s5 + $0x48] sm:$0xff] %vm1536_vm0, %v1513_v17 }
 0x250   :  { %1547 = vst.msk [vmem:[%s3681_s5 + $0x50] sm:$0xff] %vm1536_vm0, %v1514_v38 }
 0x251   :  { %1548 = vst.msk [vmem:[%s3681_s5 + $0x58] sm:$0xff] %vm1536_vm0, %v1515_v42 }
 0x273   :  { %v1481_v30 = vpop.permute.xlu1 %1480 }
 0x274   :  { %v1504_v58 = vsel %vm264_vm14, %v3137_v3, %v1481_v30  ;;  %v1505_v24 = vsel %vm264_vm14, %v3146_v10, %v1481_v30  ;;  %v1506_v23 = vsel %vm264_vm14, %v3154_v28, %v1481_v30  ;;  %v1507_v63 = vsel %vm264_vm14, %v3160_v54, %v1481_v30 }
 0x275   :  { %1537 = vst.msk [vmem:[%s3681_s5] sm:$0xff] %vm1536_vm0, %v1504_v58 }
 0x276   :  { %v1491_v2 = vpop.permute.xlu2 %1490  ;;  %1538 = vst.msk [vmem:[%s3681_s5 + $0x8] sm:$0xff] %vm1536_vm0, %v1505_v24 }
 0x277   :  { %v1524_v3 = vsel %vm264_vm14, %v3326_v5, %v1491_v2  ;;  %1539 = vst.msk [vmem:[%s3681_s5 + $0x10] sm:$0xff] %vm1536_vm0, %v1506_v23  ;;  %v1525_v10 = vsel %vm264_vm14, %v3330_v36, %v1491_v2 }
 0x278   :  { %1540 = vst.msk [vmem:[%s3681_s5 + $0x18] sm:$0xff] %vm1536_vm0, %v1507_v63 }
 0x279   :  { %1557 = vst.msk [vmem:[%s3681_s5 + $0xa0] sm:$0xff] %vm1536_vm0, %v1524_v3 }
 0x27a   :  { %v1489_v28 = vpop.permute.xlu0 %1488  ;;  %1558 = vst.msk [vmem:[%s3681_s5 + $0xa8] sm:$0xff] %vm1536_vm0, %v1525_v10 }
 0x27b   :  { %v1520_v54 = vsel %vm264_vm14, %v3190_v6, %v1489_v28  ;;  %v1521_v5 = vsel %vm264_vm14, %v3198_v0, %v1489_v28  ;;  %v1522_v36 = vsel %vm264_vm14, %v3207_v22, %v1489_v28  ;;  %v1523_v14 = vsel %vm264_vm14, %v3211_v46, %v1489_v28 }
 0x27c   :  { %1553 = vst.msk [vmem:[%s3681_s5 + $0x80] sm:$0xff] %vm1536_vm0, %v1520_v54  ;;  %v1526_v6 = vsel %vm264_vm14, %v3339_v55, %v1491_v2  ;;  %v1527_v0 = vsel %vm264_vm14, %v3352_v12, %v1491_v2 }
 0x27d   :  { %1554 = vst.msk [vmem:[%s3681_s5 + $0x88] sm:$0xff] %vm1536_vm0, %v1521_v5 }
 0x27e   :  { %1555 = vst.msk [vmem:[%s3681_s5 + $0x90] sm:$0xff] %vm1536_vm0, %v1522_v36 }
 0x27f   :  { %1556 = vst.msk [vmem:[%s3681_s5 + $0x98] sm:$0xff] %vm1536_vm0, %v1523_v14 }
 0x280   :  { %1559 = vst.msk [vmem:[%s3681_s5 + $0xb0] sm:$0xff] %vm1536_vm0, %v1526_v6 }
 0x281   :  { %1560 = vst.msk [vmem:[%s3681_s5 + $0xb8] sm:$0xff] %vm1536_vm0, %v1527_v0 }
 0x299   :  { %v1483_v22 = vpop.permute.xlu0 %1482 }
 0x29a   :  { %v1508_v46 = vsel %vm264_vm14, %v3408_v9, %v1483_v22  ;;  %v1509_v55 = vsel %vm264_vm14, %v3414_v37, %v1483_v22  ;;  %v1510_v12 = vsel %vm264_vm14, %v3420_v52, %v1483_v22  ;;  %v1511_v11 = vsel %vm264_vm14, %v3427_v45, %v1483_v22 }
 0x29b   :  { %1541 = vst.msk [vmem:[%s3681_s5 + $0x20] sm:$0xff] %vm1536_vm0, %v1508_v46 }
 0x29c   :  { %1542 = vst.msk [vmem:[%s3681_s5 + $0x28] sm:$0xff] %vm1536_vm0, %v1509_v55 }
 0x29d   :  { %1543 = vst.msk [vmem:[%s3681_s5 + $0x30] sm:$0xff] %vm1536_vm0, %v1510_v12 }
 0x29e   :  { %1544 = vst.msk [vmem:[%s3681_s5 + $0x38] sm:$0xff] %vm1536_vm0, %v1511_v11 }
 0x2a0   :  { %v1487_v9 = vpop.permute.xlu1 %1486 }
 0x2a1   :  { %v1516_v37 = vsel %vm264_vm14, %v3449_v27, %v1487_v9  ;;  %v1517_v52 = vsel %vm264_vm14, %v3455_v53, %v1487_v9  ;;  %v1518_v45 = vsel %vm264_vm14, %v3465_v4, %v1487_v9  ;;  %v1519_v51 = vsel %vm264_vm14, %v3469_v26, %v1487_v9  ;;  %v1495_v57 = vpop.permute.xlu0 %1494 }
 0x2a2   :  { %1549 = vst.msk [vmem:[%s3681_s5 + $0x60] sm:$0xff] %vm1536_vm0, %v1516_v37  ;;  %v1532_v27 = vsel %vm264_vm14, %v3277_v44, %v1495_v57  ;;  %v1533_v53 = vsel %vm264_vm14, %v3287_v50, %v1495_v57  ;;  %v1534_v4 = vsel %vm264_vm14, %v3259_v40, %v1495_v57  ;;  %v1535_v26 = vsel %vm264_vm14, %v3443_v7, %v1495_v57 }
 0x2a3   :  { %1550 = vst.msk [vmem:[%s3681_s5 + $0x68] sm:$0xff] %vm1536_vm0, %v1517_v52 }
 0x2a4   :  { %1551 = vst.msk [vmem:[%s3681_s5 + $0x70] sm:$0xff] %vm1536_vm0, %v1518_v45 }
 0x2a5   :  { %1552 = vst.msk [vmem:[%s3681_s5 + $0x78] sm:$0xff] %vm1536_vm0, %v1519_v51 }
 0x2a6   :  { %1565 = vst.msk [vmem:[%s3681_s5 + $0xe0] sm:$0xff] %vm1536_vm0, %v1532_v27 }
 0x2a7   :  { %1566 = vst.msk [vmem:[%s3681_s5 + $0xe8] sm:$0xff] %vm1536_vm0, %v1533_v53 }
 0x2a8   :  { %1567 = vst.msk [vmem:[%s3681_s5 + $0xf0] sm:$0xff] %vm1536_vm0, %v1534_v4  ;;  %v1493_v44 = vpop.permute.xlu1 %1492 }
 0x2a9   :  { %1568 = vst.msk [vmem:[%s3681_s5 + $0xf8] sm:$0xff] %vm1536_vm0, %v1535_v26  ;;  %v1528_v40 = vsel %vm264_vm14, %v3387_v47, %v1493_v44  ;;  %v1529_v50 = vsel %vm264_vm14, %v3391_v1, %v1493_v44  ;;  %v1530_v7 = vsel %vm264_vm14, %v3402_v49, %v1493_v44  ;;  %v1531_v56 = vsel %vm264_vm14, %v3436_v62, %v1493_v44 }
 0x2aa   :  { %1561 = vst.msk [vmem:[%s3681_s5 + $0xc0] sm:$0xff] %vm1536_vm0, %v1528_v40 }
 0x2ab   :  { %1562 = vst.msk [vmem:[%s3681_s5 + $0xc8] sm:$0xff] %vm1536_vm0, %v1529_v50 }
 0x2ac   :  { %1563 = vst.msk [vmem:[%s3681_s5 + $0xd0] sm:$0xff] %vm1536_vm0, %v1530_v7 }
 0x2ad   :  { %1564 = vst.msk [vmem:[%s3681_s5 + $0xd8] sm:$0xff] %vm1536_vm0, %v1531_v56 }

</bundles_post_ra>
